<compile_context>
chip_gen: v7x
topology: tpu7x:2x2x1
jax: 0.10.0
libtpu: 0.0.40
codegen_flags: <defaults>
</compile_context>

<pallas_src>
import functools

import jax
import jax.numpy as jnp
from jax.experimental import pallas as pl
from jax.experimental.pallas import tpu as pltpu


def _round_up(x, m):
    return (x + m - 1) // m * m


# ----------------------------------------------------------------------------
# Fused image encoder kernel: conv3x3(pad=1) -> ReLU -> GAP -> Linear
# one grid step per image; "parallel" grid axis
# ----------------------------------------------------------------------------
def _img_encoder_kernel(x_ref, cw_ref, cb_ref, mask_ref, fw_ref, fb_ref, o_ref,
                        *, H, W):
    """One image per grid step.

    x_ref    : (1, rows, C)  f32  zero-padded image, (H+2, W+2) flattened
                                  row-major plus slack rows.
    cw_ref   : (9, C, C1p)   bf16 conv taps, (dy, dx)-major.
    cb_ref   : (1, C1p)      f32
    mask_ref : (H*(W+2), 1)  f32  1/(H*W) on valid columns, 0 on the two
                                  phantom columns per image row (folds in the
                                  global-average-pool scale).
    fw_ref   : (C1p, Dp)     bf16
    fb_ref   : (1, Dp)       f32
    o_ref    : (1, 1, Dp)    f32
    """
    Wp = W + 2
    P = H * Wp
    x = x_ref[0]                                    # (rows, C) f32
    C1p = cw_ref.shape[-1]

    # 3x3 conv as 9 shifted-window matmuls (bf16 operands, f32 accumulate).
    acc = jnp.zeros((P, C1p), jnp.float32)
    t = 0
    for dy in range(3):
        for dx in range(3):
            off = dy * Wp + dx
            win = x[off:off + P, :].astype(jnp.bfloat16)            # (P, C)
            acc = acc + jnp.dot(win, cw_ref[t],
                                preferred_element_type=jnp.float32)
            t += 1

    conv = jnp.maximum(acc + cb_ref[...], 0.0)                      # (P, C1p)
    # Global average pool: phantom-column mask and 1/(H*W) are pre-folded into
    # mask_ref, so pooling is a single VPU multiply + sublane reduce.
    pooled = jnp.sum(conv * mask_ref[...], axis=0, keepdims=True)   # (1, C1p)

    emb = jnp.dot(pooled.astype(jnp.bfloat16), fw_ref[...],
                  preferred_element_type=jnp.float32) + fb_ref[...]
    o_ref[...] = emb.reshape(o_ref.shape).astype(o_ref.dtype)


def encode_image(x_nchw, params):
    """ImageFeatureExtractor: fused conv3x3 -> ReLU -> GAP -> Linear(D)."""
    cw, cb = params["conv_w"], params["conv_b"]
    fw, fb = params["fc_w"], params["fc_b"]
    D = params["embedding_dim"]
    C1p, Dp = fw.shape

    N, C, H, W = x_nchw.shape
    Wp = W + 2
    P = H * Wp

    # NCHW -> NHWC, zero-pad spatially, flatten (H+2, W+2) row-major, and add
    # slack rows so every shifted conv window stays in bounds (no HBM im2col).
    x = jnp.transpose(x_nchw, (0, 2, 3, 1)).astype(jnp.float32)
    xpad = jnp.pad(x, ((0, 0), (1, 1), (1, 1), (0, 0)))
    rows = _round_up((H + 3) * Wp, 8)
    xflat = jnp.pad(xpad.reshape(N, (H + 2) * Wp, C),
                    ((0, 0), (0, rows - (H + 2) * Wp), (0, 0)))

    col = jnp.arange(P) % Wp
    mask = jnp.where(col < W, 1.0 / (H * W), 0.0).astype(jnp.float32)
    mask = mask.reshape(P, 1)

    flops = int(2 * N * (9 * P * C * C1p + C1p * Dp))
    bytes_accessed = int(xflat.size * 4 + mask.size * 4 + cw.size * 2
                         + fw.size * 2 + (cb.size + fb.size) * 4 + N * Dp * 4)

    out = pl.pallas_call(
        functools.partial(_img_encoder_kernel, H=H, W=W),
        out_shape=jax.ShapeDtypeStruct((N, 1, Dp), jnp.float32),
        grid=(N,),
        in_specs=[
            pl.BlockSpec((1, rows, C), lambda n: (n, 0, 0)),
            pl.BlockSpec((9, C, C1p), lambda n: (0, 0, 0)),
            pl.BlockSpec((1, C1p), lambda n: (0, 0)),
            pl.BlockSpec((P, 1), lambda n: (0, 0)),
            pl.BlockSpec((C1p, Dp), lambda n: (0, 0)),
            pl.BlockSpec((1, Dp), lambda n: (0, 0)),
        ],
        out_specs=pl.BlockSpec((1, 1, Dp), lambda n: (n, 0, 0)),
        compiler_params=pltpu.CompilerParams(
            dimension_semantics=("parallel",),
            vmem_limit_bytes=32 * 1024 * 1024),
        cost_estimate=pl.CostEstimate(flops=flops, transcendentals=0,
                                      bytes_accessed=bytes_accessed),
    )(xflat, cw, cb, mask, fw, fb)
    return out[:, 0, :D]


# ----------------------------------------------------------------------------
# Fused 2-layer GCN + global mean pool (algebraically reordered)
# ----------------------------------------------------------------------------
def _gcn_kernel(adj_ref, x_ref, w1_ref, b1_ref, w2_ref, b2_ref, pool_ref, o_ref):
    """out = (pool@adj) @ (relu(adj @ (x@w1) + b1) @ w2) + rowsum(pool)*b2."""
    adj = adj_ref[...]                                              # (Nnp, Nnp) bf16
    xw1 = jnp.dot(x_ref[...], w1_ref[...],
                  preferred_element_type=jnp.float32)               # (Nnp, Hp)
    h1 = jnp.dot(adj, xw1.astype(jnp.bfloat16),
                 preferred_element_type=jnp.float32)
    h1 = jnp.maximum(h1 + b1_ref[...], 0.0)                         # (Nnp, Hp)
    h1w2 = jnp.dot(h1.astype(jnp.bfloat16), w2_ref[...],
                   preferred_element_type=jnp.float32)              # (Nnp, Dp)
    p2 = jnp.dot(pool_ref[...], adj,
                 preferred_element_type=jnp.float32)                # (Gp, Nnp)
    out = jnp.dot(p2.astype(jnp.bfloat16), h1w2.astype(jnp.bfloat16),
                  preferred_element_type=jnp.float32)               # (Gp, Dp)
    psum = jnp.sum(pool_ref[...].astype(jnp.float32), axis=1, keepdims=True)
    o_ref[...] = (out + psum * b2_ref[...]).astype(o_ref.dtype)


def build_norm_adjacency(edge_index, num_nodes):
    """Dense GCN adjacency: D^-1/2 (A + I) D^-1/2 (symmetric, self-loops)."""
    src, dst = edge_index[0], edge_index[1]
    adj = jnp.zeros((num_nodes, num_nodes), jnp.float32)
    adj = adj.at[src, dst].set(1.0)
    adj = adj.at[dst, src].set(1.0)
    adj = adj + jnp.eye(num_nodes, dtype=jnp.float32)
    adj = jnp.minimum(adj, 1.0)
    deg = jnp.sum(adj, axis=1)
    dinv = 1.0 / jnp.sqrt(jnp.maximum(deg, 1.0))
    return adj * dinv[:, None] * dinv[None, :]


def encode_graph(x, edge_index, batch, params, num_graphs):
    """GraphFeatureExtractor: 2-layer GCN + global mean pool per graph."""
    w1, b1 = params["w1"], params["b1"]
    w2, b2 = params["w2"], params["b2"]
    D = params["embedding_dim"]
    Fp, Hp = w1.shape
    Dp = w2.shape[1]

    Nn, F = x.shape
    adj = build_norm_adjacency(edge_index, Nn)
    if batch is None:
        batch = jnp.zeros((Nn,), jnp.int32)
        num_graphs = 1
    G = num_graphs
    onehot = (batch[None, :] == jnp.arange(G)[:, None]).astype(jnp.float32)
    counts = jnp.maximum(jnp.sum(onehot, axis=1, keepdims=True), 1.0)
    pool = onehot / counts                                          # (G, Nn)

    # Pad node / graph / feature dims for sublane & lane alignment.
    Nnp = _round_up(Nn, 8)
    Gp = _round_up(G, 8)
    adj_p = jnp.zeros((Nnp, Nnp), jnp.float32).at[:Nn, :Nn].set(adj)
    x_p = jnp.zeros((Nnp, Fp), jnp.float32).at[:Nn, :F].set(x)
    pool_p = jnp.zeros((Gp, Nnp), jnp.float32).at[:G, :Nn].set(pool)
    adj_p = adj_p.astype(jnp.bfloat16)
    x_p = x_p.astype(jnp.bfloat16)
    pool_p = pool_p.astype(jnp.bfloat16)

    flops = int(2 * (Nnp * Fp * Hp + Nnp * Nnp * Hp + Nnp * Hp * Dp
                     + Gp * Nnp * Nnp + Gp * Nnp * Dp))
    bytes_accessed = int((adj_p.size + x_p.size + pool_p.size
                          + w1.size + w2.size) * 2
                         + (b1.size + b2.size + Gp * Dp) * 4)

    # TODO(synk): for large graphs (Nn >~ 2000 on v7x's 64 MiB VMEM) the dense
    #             adjacency should be tiled over node blocks with an
    #             accumulating ("arbitrary") grid axis; at these demo sizes a
    #             single fused block is both correct and fastest.
    out = pl.pallas_call(
        _gcn_kernel,
        out_shape=jax.ShapeDtypeStruct((Gp, Dp), jnp.float32),
        grid=(1,),
        in_specs=[
            pl.BlockSpec((Nnp, Nnp), lambda i: (0, 0)),
            pl.BlockSpec((Nnp, Fp), lambda i: (0, 0)),
            pl.BlockSpec((Fp, Hp), lambda i: (0, 0)),
            pl.BlockSpec((1, Hp), lambda i: (0, 0)),
            pl.BlockSpec((Hp, Dp), lambda i: (0, 0)),
            pl.BlockSpec((1, Dp), lambda i: (0, 0)),
            pl.BlockSpec((Gp, Nnp), lambda i: (0, 0)),
        ],
        out_specs=pl.BlockSpec((Gp, Dp), lambda i: (0, 0)),
        compiler_params=pltpu.CompilerParams(
            dimension_semantics=("arbitrary",),
            vmem_limit_bytes=32 * 1024 * 1024),
        cost_estimate=pl.CostEstimate(flops=flops, transcendentals=0,
                                      bytes_accessed=bytes_accessed),
    )(adj_p, x_p, w1, b1, w2, b2, pool_p)
    return out[:G, :D]


# ----------------------------------------------------------------------------
# Parameters (stored lane-padded + bf16 so kernels get MXU-friendly operands)
# ----------------------------------------------------------------------------
def init_params(key, embedding_dim=32, in_channels=3, conv_channels=8,
                graph_input_dim=1):
    hidden = embedding_dim * 2
    C1p = _round_up(conv_channels, 128)
    Hp = _round_up(hidden, 128)
    Dp = _round_up(embedding_dim, 128)
    Fp = _round_up(graph_input_dim, 8)
    keys = jax.random.split(key, 6)

    def img_params(kc, kf):
        cw = 0.1 * jax.random.normal(
            kc, (3, 3, in_channels, conv_channels), jnp.float32)
        fw = 0.1 * jax.random.normal(
            kf, (conv_channels, embedding_dim), jnp.float32)
        # Tap-major (ky, kx) packing with lane-padded output channels.
        # TODO(synk): real PyTorch Conv2d weights are OIHW; transpose to
        #             (ky, kx, C_in, C_out) before this packing.
        cw_p = jnp.zeros((9, in_channels, C1p), jnp.float32)
        cw_p = cw_p.at[:, :, :conv_channels].set(
            cw.reshape(9, in_channels, conv_channels))
        fw_p = jnp.zeros((C1p, Dp), jnp.float32)
        fw_p = fw_p.at[:conv_channels, :embedding_dim].set(fw)
        return {
            "conv_w": cw_p.astype(jnp.bfloat16),
            "conv_b": jnp.zeros((1, C1p), jnp.float32),
            "fc_w": fw_p.astype(jnp.bfloat16),
            "fc_b": jnp.zeros((1, Dp), jnp.float32),
            "embedding_dim": embedding_dim,
        }

    w1 = 0.1 * jax.random.normal(keys[4], (graph_input_dim, hidden), jnp.float32)
    w2 = 0.1 * jax.random.normal(keys[5], (hidden, embedding_dim), jnp.float32)
    w1_p = jnp.zeros((Fp, Hp), jnp.float32).at[:graph_input_dim, :hidden].set(w1)
    w2_p = jnp.zeros((Hp, Dp), jnp.float32).at[:hidden, :embedding_dim].set(w2)
    graph = {
        "w1": w1_p.astype(jnp.bfloat16),
        "b1": jnp.zeros((1, Hp), jnp.float32),
        "w2": w2_p.astype(jnp.bfloat16),
        "b2": jnp.zeros((1, Dp), jnp.float32),
        "embedding_dim": embedding_dim,
    }
    return {
        "assembly": img_params(keys[0], keys[1]),
        "part": img_params(keys[2], keys[3]),
        "graph": graph,
        # nn.Parameter(torch.ones([]) * 0.07); present in the module but never
        # used by forward() (it only feeds compute_loss), so it is carried but
        # intentionally not applied here.
        "temperature": jnp.float32(0.07),
    }


# ----------------------------------------------------------------------------
# RetrievalModel forward
# ----------------------------------------------------------------------------
def retrieval_model_forward(params, assembly_images, part_images,
                            graph_x, graph_edge_index, graph_batch,
                            num_graphs):
    outputs = {}
    outputs["assembly_embeddings"] = encode_image(assembly_images,
                                                  params["assembly"])
    outputs["part_embeddings"] = encode_image(part_images, params["part"])
    outputs["graph_embeddings"] = encode_graph(graph_x, graph_edge_index,
                                               graph_batch, params["graph"],
                                               num_graphs)
    return outputs


# ----------------------------------------------------------------------------
if __name__ == "__main__":
    key = jax.random.PRNGKey(0)
    k_param, k_asm, k_part, k_gx = jax.random.split(key, 4)

    embedding_dim = 32
    params = init_params(k_param, embedding_dim=embedding_dim)

    # Small deterministic inputs (PyTorch NCHW convention for images).
    assembly_images = jax.random.normal(k_asm, (2, 3, 16, 16), jnp.float32)
    part_images = jax.random.normal(k_part, (4, 3, 16, 16), jnp.float32)

    # Simple batched graph: 8 nodes (4 per graph), input_dim=1.
    graph_x = jax.random.normal(k_gx, (8, 1), jnp.float32)
    graph_edge_index = jnp.array(
        [[0, 1, 2, 3, 4, 5, 6, 7],
         [1, 2, 3, 0, 5, 6, 7, 4]], dtype=jnp.int32)
    graph_batch = jnp.array([0, 0, 0, 0, 1, 1, 1, 1], dtype=jnp.int32)
    num_graphs = 2

    outputs = retrieval_model_forward(params, assembly_images, part_images,
                                      graph_x, graph_edge_index, graph_batch,
                                      num_graphs)
    outputs = jax.block_until_ready(outputs)

    assert outputs["assembly_embeddings"].shape == (2, embedding_dim)
    assert outputs["part_embeddings"].shape == (4, embedding_dim)
    assert outputs["graph_embeddings"].shape == (num_graphs, embedding_dim)
    assert all(bool(jnp.all(jnp.isfinite(v))) for v in outputs.values())

    print("KERNEL_OK")
</pallas_src>

<mosaic_0001>
module attributes {stable_mosaic.version = 11 : i64} {
  func.func @_img_encoder_kernel(%arg0: i32, %arg1: memref<1x344x3xf32, #tpu.memory_space<vmem>>, %arg2: memref<9x3x128xbf16, #tpu.memory_space<vmem>>, %arg3: memref<1x128xf32, #tpu.memory_space<vmem>>, %arg4: memref<288x1xf32, #tpu.memory_space<vmem>>, %arg5: memref<128x128xbf16, #tpu.memory_space<vmem>>, %arg6: memref<1x128xf32, #tpu.memory_space<vmem>>, %arg7: memref<1x1x128xf32, #tpu.memory_space<vmem>>) attributes {dimension_semantics = [#tpu.dimension_semantics<parallel>], iteration_bounds = array<i64: 2>, scalar_prefetch = 0 : i64, scratch_operands = 0 : i64, tpu.core_type = #tpu.core_type<tc>, window_params = [{transform_indices = @transform_0, window_bounds = array<i64: 1, 344, 3>}, {pipeline_mode = #tpu.pipeline_mode<synchronous>, transform_indices = @transform_1, window_bounds = array<i64: 9, 3, 128>}, {pipeline_mode = #tpu.pipeline_mode<synchronous>, transform_indices = @transform_2, window_bounds = array<i64: 1, 128>}, {pipeline_mode = #tpu.pipeline_mode<synchronous>, transform_indices = @transform_3, window_bounds = array<i64: 288, 1>}, {pipeline_mode = #tpu.pipeline_mode<synchronous>, transform_indices = @transform_4, window_bounds = array<i64: 128, 128>}, {pipeline_mode = #tpu.pipeline_mode<synchronous>, transform_indices = @transform_5, window_bounds = array<i64: 1, 128>}, {transform_indices = @transform_6, window_bounds = array<i64: 1, 1, 128>}]} {
    %c0 = arith.constant 0 : index
    %c0_0 = arith.constant 0 : index
    %c0_1 = arith.constant 0 : index
    %0 = vector.load %arg1[%c0, %c0_0, %c0_1] : memref<1x344x3xf32, #tpu.memory_space<vmem>>, vector<1x344x3xf32>
    %1 = vector.shape_cast %0 : vector<1x344x3xf32> to vector<344x3xf32>
    %cst = arith.constant 0.000000e+00 : f32
    %2 = vector.broadcast %cst : f32 to vector<288x128xf32>
    %3 = vector.extract_strided_slice %1 {offsets = [0, 0], sizes = [288, 3], strides = [1, 1]} : vector<344x3xf32> to vector<288x3xf32>
    %4 = arith.truncf %3 : vector<288x3xf32> to vector<288x3xbf16>
    %c0_2 = arith.constant 0 : index
    %c0_3 = arith.constant 0 : index
    %c0_4 = arith.constant 0 : index
    %5 = vector.load %arg2[%c0_2, %c0_3, %c0_4] : memref<9x3x128xbf16, #tpu.memory_space<vmem>>, vector<1x3x128xbf16>
    %6 = vector.shape_cast %5 : vector<1x3x128xbf16> to vector<3x128xbf16>
    %cst_5 = arith.constant dense<0.000000e+00> : vector<288x128xf32>
    %7 = tpu.matmul %4, %6, %cst_5 {dimension_numbers = #tpu.dot_dimension_numbers<[1], [0], [0], [1], [0, 0, 1, 1], [], []>} : vector<288x3xbf16>, vector<3x128xbf16>, vector<288x128xf32> -> vector<288x128xf32>
    %8 = arith.addf %2, %7 : vector<288x128xf32>
    %9 = vector.extract_strided_slice %1 {offsets = [1, 0], sizes = [288, 3], strides = [1, 1]} : vector<344x3xf32> to vector<288x3xf32>
    %10 = arith.truncf %9 : vector<288x3xf32> to vector<288x3xbf16>
    %c1 = arith.constant 1 : index
    %c0_6 = arith.constant 0 : index
    %c0_7 = arith.constant 0 : index
    %11 = vector.load %arg2[%c1, %c0_6, %c0_7] : memref<9x3x128xbf16, #tpu.memory_space<vmem>>, vector<1x3x128xbf16>
    %12 = vector.shape_cast %11 : vector<1x3x128xbf16> to vector<3x128xbf16>
    %cst_8 = arith.constant dense<0.000000e+00> : vector<288x128xf32>
    %13 = tpu.matmul %10, %12, %cst_8 {dimension_numbers = #tpu.dot_dimension_numbers<[1], [0], [0], [1], [0, 0, 1, 1], [], []>} : vector<288x3xbf16>, vector<3x128xbf16>, vector<288x128xf32> -> vector<288x128xf32>
    %14 = arith.addf %8, %13 : vector<288x128xf32>
    %15 = vector.extract_strided_slice %1 {offsets = [2, 0], sizes = [288, 3], strides = [1, 1]} : vector<344x3xf32> to vector<288x3xf32>
    %16 = arith.truncf %15 : vector<288x3xf32> to vector<288x3xbf16>
    %c2 = arith.constant 2 : index
    %c0_9 = arith.constant 0 : index
    %c0_10 = arith.constant 0 : index
    %17 = vector.load %arg2[%c2, %c0_9, %c0_10] : memref<9x3x128xbf16, #tpu.memory_space<vmem>>, vector<1x3x128xbf16>
    %18 = vector.shape_cast %17 : vector<1x3x128xbf16> to vector<3x128xbf16>
    %cst_11 = arith.constant dense<0.000000e+00> : vector<288x128xf32>
    %19 = tpu.matmul %16, %18, %cst_11 {dimension_numbers = #tpu.dot_dimension_numbers<[1], [0], [0], [1], [0, 0, 1, 1], [], []>} : vector<288x3xbf16>, vector<3x128xbf16>, vector<288x128xf32> -> vector<288x128xf32>
    %20 = arith.addf %14, %19 : vector<288x128xf32>
    %21 = vector.extract_strided_slice %1 {offsets = [18, 0], sizes = [288, 3], strides = [1, 1]} : vector<344x3xf32> to vector<288x3xf32>
    %22 = arith.truncf %21 : vector<288x3xf32> to vector<288x3xbf16>
    %c3 = arith.constant 3 : index
    %c0_12 = arith.constant 0 : index
    %c0_13 = arith.constant 0 : index
    %23 = vector.load %arg2[%c3, %c0_12, %c0_13] : memref<9x3x128xbf16, #tpu.memory_space<vmem>>, vector<1x3x128xbf16>
    %24 = vector.shape_cast %23 : vector<1x3x128xbf16> to vector<3x128xbf16>
    %cst_14 = arith.constant dense<0.000000e+00> : vector<288x128xf32>
    %25 = tpu.matmul %22, %24, %cst_14 {dimension_numbers = #tpu.dot_dimension_numbers<[1], [0], [0], [1], [0, 0, 1, 1], [], []>} : vector<288x3xbf16>, vector<3x128xbf16>, vector<288x128xf32> -> vector<288x128xf32>
    %26 = arith.addf %20, %25 : vector<288x128xf32>
    %27 = vector.extract_strided_slice %1 {offsets = [19, 0], sizes = [288, 3], strides = [1, 1]} : vector<344x3xf32> to vector<288x3xf32>
    %28 = arith.truncf %27 : vector<288x3xf32> to vector<288x3xbf16>
    %c4 = arith.constant 4 : index
    %c0_15 = arith.constant 0 : index
    %c0_16 = arith.constant 0 : index
    %29 = vector.load %arg2[%c4, %c0_15, %c0_16] : memref<9x3x128xbf16, #tpu.memory_space<vmem>>, vector<1x3x128xbf16>
    %30 = vector.shape_cast %29 : vector<1x3x128xbf16> to vector<3x128xbf16>
    %cst_17 = arith.constant dense<0.000000e+00> : vector<288x128xf32>
    %31 = tpu.matmul %28, %30, %cst_17 {dimension_numbers = #tpu.dot_dimension_numbers<[1], [0], [0], [1], [0, 0, 1, 1], [], []>} : vector<288x3xbf16>, vector<3x128xbf16>, vector<288x128xf32> -> vector<288x128xf32>
    %32 = arith.addf %26, %31 : vector<288x128xf32>
    %33 = vector.extract_strided_slice %1 {offsets = [20, 0], sizes = [288, 3], strides = [1, 1]} : vector<344x3xf32> to vector<288x3xf32>
    %34 = arith.truncf %33 : vector<288x3xf32> to vector<288x3xbf16>
    %c5 = arith.constant 5 : index
    %c0_18 = arith.constant 0 : index
    %c0_19 = arith.constant 0 : index
    %35 = vector.load %arg2[%c5, %c0_18, %c0_19] : memref<9x3x128xbf16, #tpu.memory_space<vmem>>, vector<1x3x128xbf16>
    %36 = vector.shape_cast %35 : vector<1x3x128xbf16> to vector<3x128xbf16>
    %cst_20 = arith.constant dense<0.000000e+00> : vector<288x128xf32>
    %37 = tpu.matmul %34, %36, %cst_20 {dimension_numbers = #tpu.dot_dimension_numbers<[1], [0], [0], [1], [0, 0, 1, 1], [], []>} : vector<288x3xbf16>, vector<3x128xbf16>, vector<288x128xf32> -> vector<288x128xf32>
    %38 = arith.addf %32, %37 : vector<288x128xf32>
    %39 = vector.extract_strided_slice %1 {offsets = [36, 0], sizes = [288, 3], strides = [1, 1]} : vector<344x3xf32> to vector<288x3xf32>
    %40 = arith.truncf %39 : vector<288x3xf32> to vector<288x3xbf16>
    %c6 = arith.constant 6 : index
    %c0_21 = arith.constant 0 : index
    %c0_22 = arith.constant 0 : index
    %41 = vector.load %arg2[%c6, %c0_21, %c0_22] : memref<9x3x128xbf16, #tpu.memory_space<vmem>>, vector<1x3x128xbf16>
    %42 = vector.shape_cast %41 : vector<1x3x128xbf16> to vector<3x128xbf16>
    %cst_23 = arith.constant dense<0.000000e+00> : vector<288x128xf32>
    %43 = tpu.matmul %40, %42, %cst_23 {dimension_numbers = #tpu.dot_dimension_numbers<[1], [0], [0], [1], [0, 0, 1, 1], [], []>} : vector<288x3xbf16>, vector<3x128xbf16>, vector<288x128xf32> -> vector<288x128xf32>
    %44 = arith.addf %38, %43 : vector<288x128xf32>
    %45 = vector.extract_strided_slice %1 {offsets = [37, 0], sizes = [288, 3], strides = [1, 1]} : vector<344x3xf32> to vector<288x3xf32>
    %46 = arith.truncf %45 : vector<288x3xf32> to vector<288x3xbf16>
    %c7 = arith.constant 7 : index
    %c0_24 = arith.constant 0 : index
    %c0_25 = arith.constant 0 : index
    %47 = vector.load %arg2[%c7, %c0_24, %c0_25] : memref<9x3x128xbf16, #tpu.memory_space<vmem>>, vector<1x3x128xbf16>
    %48 = vector.shape_cast %47 : vector<1x3x128xbf16> to vector<3x128xbf16>
    %cst_26 = arith.constant dense<0.000000e+00> : vector<288x128xf32>
    %49 = tpu.matmul %46, %48, %cst_26 {dimension_numbers = #tpu.dot_dimension_numbers<[1], [0], [0], [1], [0, 0, 1, 1], [], []>} : vector<288x3xbf16>, vector<3x128xbf16>, vector<288x128xf32> -> vector<288x128xf32>
    %50 = arith.addf %44, %49 : vector<288x128xf32>
    %51 = vector.extract_strided_slice %1 {offsets = [38, 0], sizes = [288, 3], strides = [1, 1]} : vector<344x3xf32> to vector<288x3xf32>
    %52 = arith.truncf %51 : vector<288x3xf32> to vector<288x3xbf16>
    %c8 = arith.constant 8 : index
    %c0_27 = arith.constant 0 : index
    %c0_28 = arith.constant 0 : index
    %53 = vector.load %arg2[%c8, %c0_27, %c0_28] : memref<9x3x128xbf16, #tpu.memory_space<vmem>>, vector<1x3x128xbf16>
    %54 = vector.shape_cast %53 : vector<1x3x128xbf16> to vector<3x128xbf16>
    %cst_29 = arith.constant dense<0.000000e+00> : vector<288x128xf32>
    %55 = tpu.matmul %52, %54, %cst_29 {dimension_numbers = #tpu.dot_dimension_numbers<[1], [0], [0], [1], [0, 0, 1, 1], [], []>} : vector<288x3xbf16>, vector<3x128xbf16>, vector<288x128xf32> -> vector<288x128xf32>
    %56 = arith.addf %50, %55 : vector<288x128xf32>
    %c0_30 = arith.constant 0 : index
    %c0_31 = arith.constant 0 : index
    %57 = vector.load %arg3[%c0_30, %c0_31] : memref<1x128xf32, #tpu.memory_space<vmem>>, vector<1x128xf32>
    %58 = vector.broadcast %57 : vector<1x128xf32> to vector<288x128xf32>
    %59 = arith.addf %56, %58 : vector<288x128xf32>
    %cst_32 = arith.constant 0.000000e+00 : f32
    %60 = vector.broadcast %cst_32 : f32 to vector<288x128xf32>
    %61 = arith.maximumf %59, %60 : vector<288x128xf32>
    %c0_33 = arith.constant 0 : index
    %c0_34 = arith.constant 0 : index
    %62 = vector.load %arg4[%c0_33, %c0_34] : memref<288x1xf32, #tpu.memory_space<vmem>>, vector<288x1xf32>
    %63 = vector.broadcast %62 : vector<288x1xf32> to vector<288x128xf32>
    %64 = arith.mulf %61, %63 : vector<288x128xf32>
    %cst_35 = arith.constant dense<0.000000e+00> : vector<128xf32>
    %65 = vector.multi_reduction <add>, %64, %cst_35 [0] : vector<288x128xf32> to vector<128xf32>
    %66 = vector.shape_cast %65 : vector<128xf32> to vector<1x128xf32>
    %67 = arith.truncf %66 : vector<1x128xf32> to vector<1x128xbf16>
    %c0_36 = arith.constant 0 : index
    %c0_37 = arith.constant 0 : index
    %68 = vector.load %arg5[%c0_36, %c0_37] : memref<128x128xbf16, #tpu.memory_space<vmem>>, vector<128x128xbf16>
    %cst_38 = arith.constant dense<0.000000e+00> : vector<1x128xf32>
    %69 = tpu.matmul %67, %68, %cst_38 {dimension_numbers = #tpu.dot_dimension_numbers<[1], [0], [0], [1], [0, 0, 1, 1], [], []>} : vector<1x128xbf16>, vector<128x128xbf16>, vector<1x128xf32> -> vector<1x128xf32>
    %c0_39 = arith.constant 0 : index
    %c0_40 = arith.constant 0 : index
    %70 = vector.load %arg6[%c0_39, %c0_40] : memref<1x128xf32, #tpu.memory_space<vmem>>, vector<1x128xf32>
    %71 = arith.addf %69, %70 : vector<1x128xf32>
    %72 = vector.shape_cast %71 : vector<1x128xf32> to vector<1x1x128xf32>
    %c0_41 = arith.constant 0 : index
    %c0_42 = arith.constant 0 : index
    %c0_43 = arith.constant 0 : index
    %73 = vector.load %arg7[%c0_41, %c0_42, %c0_43] : memref<1x1x128xf32, #tpu.memory_space<vmem>>, vector<1x1x128xf32>
    tpu.vector_store %arg7[%c0_41, %c0_42, %c0_43], %72 {strides = array<i32>} : memref<1x1x128xf32, #tpu.memory_space<vmem>>, vector<1x1x128xf32>,
    return
  }
  func.func @transform_0(%arg0: i32) -> (i32, i32, i32) {
    %c0_i32 = arith.constant 0 : i32
    %c0_i32_0 = arith.constant 0 : i32
    %c0_i32_1 = arith.constant 0 : i32
    return %arg0, %c0_i32, %c0_i32_0 : i32, i32, i32
  }
  func.func @transform_1(%arg0: i32) -> (i32, i32, i32) {
    %c0_i32 = arith.constant 0 : i32
    %c0_i32_0 = arith.constant 0 : i32
    %c0_i32_1 = arith.constant 0 : i32
    %c0_i32_2 = arith.constant 0 : i32
    return %c0_i32, %c0_i32_0, %c0_i32_1 : i32, i32, i32
  }
  func.func @transform_2(%arg0: i32) -> (i32, i32) {
    %c0_i32 = arith.constant 0 : i32
    %c0_i32_0 = arith.constant 0 : i32
    %c0_i32_1 = arith.constant 0 : i32
    return %c0_i32, %c0_i32_0 : i32, i32
  }
  func.func @transform_3(%arg0: i32) -> (i32, i32) {
    %c0_i32 = arith.constant 0 : i32
    %c0_i32_0 = arith.constant 0 : i32
    %c0_i32_1 = arith.constant 0 : i32
    return %c0_i32, %c0_i32_0 : i32, i32
  }
  func.func @transform_4(%arg0: i32) -> (i32, i32) {
    %c0_i32 = arith.constant 0 : i32
    %c0_i32_0 = arith.constant 0 : i32
    %c0_i32_1 = arith.constant 0 : i32
    return %c0_i32, %c0_i32_0 : i32, i32
  }
  func.func @transform_5(%arg0: i32) -> (i32, i32) {
    %c0_i32 = arith.constant 0 : i32
    %c0_i32_0 = arith.constant 0 : i32
    %c0_i32_1 = arith.constant 0 : i32
    return %c0_i32, %c0_i32_0 : i32, i32
  }
  func.func @transform_6(%arg0: i32) -> (i32, i32, i32) {
    %c0_i32 = arith.constant 0 : i32
    %c0_i32_0 = arith.constant 0 : i32
    %c0_i32_1 = arith.constant 0 : i32
    return %arg0, %c0_i32, %c0_i32_0 : i32, i32, i32
  }
}

</mosaic_0001>

<bundles_post_ra>
// kernel: tpu_custom_call.1
= control target key start
LH: loop header
LB: loop body
LE: loop exit
PB: predicated region body
PF: predicated region fallthrough
CT: control target
= control target key end

     0   :  { %11 = vsyncpa [#allocation3], 0  ;;  %s6062_s0 = inlined_call_operand.vmem [shape: f32[2,344,3], index: 0, kind: input, shape index: {}]   ;;  %s6063_s1 = inlined_call_operand.vmem [shape: bf16[9,3,128], index: 1, kind: input, shape index: {}]   ;;  %s6064_s2 = inlined_call_operand.vmem [shape: f32[1,128], index: 2, kind: input, shape index: {}]   ;;  %s6065_s3 = inlined_call_operand.vmem [shape: f32[288,1], index: 3, kind: input, shape index: {}]   ;;  %s6066_s4 = inlined_call_operand.vmem [shape: bf16[128,128], index: 4, kind: input, shape index: {}]   ;;  %s6067_s5 = inlined_call_operand.vmem [shape: f32[1,128], index: 5, kind: input, shape index: {}]   ;;  %s6068_s6 = inlined_call_operand.hbm [shape: f32[2,1,128], index: 6, kind: output, shape index: {}]  }
   0x1   :  { %13 = vsyncpa [#allocation3 + $0x1], 0  ;;  %s4770_s21 = smov 0   ;;  %s4772_s22 = smov 0  }
   0x2   :  { %s4774_s23 = smov 0   ;;  %s4776_s24 = smov 0  }
   0x3 LB: > { %s4791_s25 = sadd.s32 4294967295, %s4728_s24   ;;  %s3593_s26 = sadd.s32 4294967294, %s4728_s24   ;;  %s4728_s24 = sphi %s4776_s24, %s6145_s24   ;;  %s4724_s23 = sphi %s4774_s23, %s6144_s23   ;;  %s4720_s22 = sphi %s4772_s22, %s6143_s22   ;;  %s4716_s21 = sphi %s4770_s21, %s6142_s21  }
   0x4   : > { %s4795_s27 = sadd.s32 1, %s4728_s24   ;;  %s157_s28 = sadd.s32 1, %s4724_s23 }
   0x5   : > { %s154_s29 = ssub.s32 %s4728_s24, %s4795_s27  ;;  %p167_p0 = scmp.ne.s32.totalorder %s4724_s23, %s4720_s22 }
   0x6   : > { %p155_p1 = scmp.eq.s32.totalorder %s154_s29, 0  ;;  %p168_p2 = scmp.eq.s32.totalorder %s4791_s25, 1 }
   0x7   : > { %p173_p3 = scmp.ne.s32.totalorder %s4720_s22, %s4716_s21  ;;  %p174_p4 = scmp.eq.s32.totalorder %s3593_s26, 1 }
   0x8   : > { %s4806_s30 = scalar_select %p155_p1, %s4724_s23, %s157_s28  }
   0x9   : > { %p4808_p5 = por %p168_p2, %p167_p0  ;;  %p4812_p6 = por %p174_p4, %p173_p3 }
   0xa   : > { %p3596_p7 = scmp.ge.s32.totalorder %s4728_s24, 1  ;;  %p215_p8 = scmp.lt.s32.totalorder %s4728_s24, 3 }
   0xc   : > { %p216_p9 = pnand %p3596_p7, %p215_p8 }
   0xe   : > { %219 = sbr.rel (%p216_p9) target bundleno = 832 (0x340), region = 44 }
  0x15   : > { %vm517_vm0 = vcmask 1040384   ;;  %vm518_vm1 = vcmask 1041408   ;;  %v3673_v0 = vld [vmem:[%s6063_s1 + $0x8] sm:$0x3]  ;;  %p244_p10 = scmp.lt.s32.totalorder %s4791_s25, 1  ;;  %v4730_v1 = vmov 65535  }
  0x16   : > { %v519_v2 = vsel %vm517_vm0, 4294967295, %v4730_v1  ;;  %v3598_v3 = vld [vmem:[%s6063_s1 + $0x2] sm:$0x3]  ;;  %v3692_v5 = vld [vmem:[%s6063_s1 + $0xa] sm:$0x3]  ;;  %vm462_vm3 = vcmask 23552  }
  0x17   : > { %v4825_v4 = vsel %vm518_vm1, %v519_v2, 0  ;;  %s245_s13 = scalar_select %p244_p10, %s4791_s25, 1  ;;  %v309_v9 = vld [vmem:[%s6063_s1] sm:$0x3]  ;;  %v3711_v11 = vld [vmem:[%s6063_s1 + $0xc] sm:$0x3] }
  0x18   : > { %v4832_v6 = vand.u32 %v3673_v0, %v4825_v4  ;;  %v522_v7 = vand.u32 %v3598_v3, %v4825_v4  ;;  %v4836_v8 = vand.u32 %v3692_v5, %v4825_v4  ;;  %v4842_v10 = vand.u32 %v4825_v4, %v309_v9  ;;  %v3635_v12 = vld [vmem:[%s6063_s1 + $0x4] sm:$0x3] }
  0x19   : > { %s4612_s18 = smul.u32 344, %s245_s13  ;;  %vm313_vm2 = vsmask.f32 7424  ;;  %vm1480_vm4 = vsmask.f32 6400  ;;  %v4875_v25 = vand.u32 %v3711_v11, %v4825_v4  ;;  %v4883_v30 = vand.u32 %v3635_v12, %v4825_v4  ;;  %s4734_s13 = smov [#allocation2]  }
  0x1a   : > { %6104 = vst [vmem:[#allocation5_spill] sm:$0xff] %v4832_v6  ;;  %4112 = vmatprep.subr.bf16.mxu0 %v4832_v6  ;;  %3960 = vmatprep.subr.bf16.mxu1 %v522_v7  ;;  %vm1838_vm5 = vcmask 1045504   ;;  %vm2380_vm6 = vsmask.f32 5376  ;;  %vm938_vm7 = vcmask 1046528   ;;  %vm2738_vm8 = vcmask 1044480  }
  0x1b   : > { %4113 = vmatpush3.bf16.msra.mxu0 %v4832_v6  ;;  %3961 = vmatpush3.bf16.msra.mxu1 %v522_v7  ;;  %s4855_s10 = scalar_lea.vmem %s6062_s0, %s4612_s18  ;;  %vm4733_vm9 = vmmov 0   ;;  %s242_s18 = sand.u32 1, %s4720_s22  }
  0x1c   : > { %v250_v13 = vld [vmem:[%s4855_s10] sm:$0xff]  ;;  %v251_v14 = vld [vmem:[%s4855_s10 + $0x8] sm:$0xff]  ;;  %v252_v15 = vld [vmem:[%s4855_s10 + $0x10] sm:$0xff]  ;;  %4150 = vmatprep.subr.bf16.mxu0 %v4836_v8  ;;  %3998 = vmatprep.subr.bf16.mxu1 %v4842_v10  ;;  %s243_s26 = scalar_lea.vmem [#allocation2], %s242_s18  ;;  %s3526_s12 = scalar_lea.sflag [#allocation3], %s242_s18 }
  0x1d   : > { %v253_v16 = vld [vmem:[%s4855_s10 + $0x18] sm:$0xff]  ;;  %v4863_v17 = vpack.c.bf16 %v251_v14, %v250_v13  ;;  %v254_v18 = vld [vmem:[%s4855_s10 + $0x20] sm:$0xff]  ;;  %v255_v19 = vld [vmem:[%s4855_s10 + $0x28] sm:$0xff]  ;;  %s3538_s28 = sshll.u32 %s243_s26, 4  ;;  %s4670_s14 = sshll.u32 %s4734_s13, 4  ;;  %s6022_s28 = int_to_ptr.vmem [resolvable:$true] %s3538_s28  ;;  %s4671_s14 = int_to_ptr.vmem [resolvable:$false] %s4670_s14 }
  0x1e   : > { %v4867_v20 = vpack.c.bf16 %v253_v16, %v252_v15  ;;  %v4869_v21 = vpack.c.bf16 %v255_v19, %v254_v18  ;;  %v256_v22 = vld [vmem:[%s4855_s10 + $0x30] sm:$0xff]  ;;  %v257_v23 = vld [vmem:[%s4855_s10 + $0x38] sm:$0xff]  ;;  %v258_v24 = vld [vmem:[%s4855_s10 + $0x40] sm:$0xff]  ;;  %s4672_s15 = scalar_lea.vmem %s4671_s14, 32  ;;  %p4673_p0 = scmp.lt.s32.totalorder %s6022_s28, %s4671_s14 }
  0x1f   : > { %v315_v26 = vshrl.u32 %v4863_v17, 16  ;;  %v317_v27 = vshll.u32 %v4863_v17, 16  ;;  %v4879_v28 = vpack.c.bf16 %v257_v23, %v256_v22  ;;  %v259_v29 = vld [vmem:[%s4855_s10 + $0x48] sm:$0xff]  ;;  %v260_v51 = vld [vmem:[%s4855_s10 + $0x50] sm:$0xff]  ;;  %v261_v56 = vld [vmem:[%s4855_s10 + $0x58] sm:$0xff] }
  0x20   : > { %v322_v31 = vshll.u32 %v4867_v20, 16  ;;  %v326_v32 = vshrl.u32 %v4867_v20, 16  ;;  %v4888_v33 = vshll.u32 %v4869_v21, 16  ;;  %v4891_v34 = vshrl.u32 %v4869_v21, 16  ;;  %v262_v57 = vld [vmem:[%s4855_s10 + $0x60] sm:$0xff]  ;;  %v263_v58 = vld [vmem:[%s4855_s10 + $0x68] sm:$0xff] }
  0x21   : > { %v319_v35 = vrot.slane %v317_v27, 1  ;;  %v4894_v36 = vshll.u32 %v4879_v28, 16  ;;  %v4897_v37 = vshrl.u32 %v4879_v28, 16  ;;  %v4899_v38 = vpack.c.bf16 %v259_v29, %v258_v24  ;;  %v264_v63 = vld [vmem:[%s4855_s10 + $0x70] sm:$0xff]  ;;  %v265_v0 = vld [vmem:[%s4855_s10 + $0x78] sm:$0xff]  ;;  %v266_v13 = vld [vmem:[%s4855_s10 + $0x80] sm:$0xff] }
  0x22   : > { %v324_v39 = vrot.slane %v322_v31, 1  ;;  %v1481_v40 = vrot.slane %v326_v32, 1  ;;  %v1482_v41 = vrot.slane %v322_v31, 2  ;;  %v1484_v42 = vrot.slane %v4891_v34, 1  ;;  %v267_v14 = vld [vmem:[%s4855_s10 + $0x88] sm:$0xff]  ;;  %v289_v6 = vld [vmem:[%s4855_s10 + $0x138] sm:$0xff] }
  0x23   : > { %v320_v43 = vor.u32 %v319_v35, %v315_v26  ;;  %v1485_v44 = vrot.slane %v4888_v33, 2  ;;  %v332_v45 = vrot.slane %v4888_v33, 1  ;;  %v1488_v46 = vrot.slane %v4897_v37, 1 }
  0x24   : > { %v328_v47 = vor.u32 %v326_v32, %v324_v39  ;;  %v1483_v48 = vor.u32 %v1482_v41, %v1481_v40  ;;  %v1489_v49 = vrot.slane %v4894_v36, 2  ;;  %v340_v50 = vrot.slane %v4894_v36, 1  ;;  %v268_v41 = vld [vmem:[%s4855_s10 + $0x90] sm:$0xff] }
  0x25   : > { %v325_v52 = vsel %vm313_vm2, %v320_v43, %v324_v39  ;;  %v1486_v53 = vor.u32 %v1485_v44, %v1484_v42  ;;  %v336_v54 = vor.u32 %v4891_v34, %v332_v45  ;;  %v4911_v55 = vshll.u32 %v4899_v38, 16  ;;  %v269_v42 = vld [vmem:[%s4855_s10 + $0x98] sm:$0xff] }
  0x26   : > { %3962 = vmatprep.mubr.msk.bf16.mxu1 %vm462_vm3, %v325_v52  ;;  %v333_v59 = vsel %vm313_vm2, %v328_v47, %v332_v45  ;;  %v1490_v60 = vor.u32 %v1489_v49, %v1488_v46  ;;  %v4919_v61 = vshrl.u32 %v4899_v38, 16  ;;  %v344_v62 = vor.u32 %v4897_v37, %v340_v50 }
  0x27   : > { %v1487_v1 = vsel %vm1480_vm4, %v1483_v48, %v1486_v53  ;;  %3963 = vmatmul.mubr.msk.bf16.vlgmr.msra.gmra.mrb[0].mxu1 %vm462_vm3, %v333_v59  ;;  %v341_v2 = vsel %vm313_vm2, %v336_v54, %v340_v50  ;;  %v1493_v3 = vrot.slane %v4911_v55, 2  ;;  %v348_v5 = vrot.slane %v4911_v55, 1  ;;  %v271_v54 = vld [vmem:[%s4855_s10 + $0xa8] sm:$0xff] }
  0x28   : > { %4114 = vmatprep.mubr.msk.bf16.mxu0 %vm462_vm3, %v1487_v1  ;;  %v1491_v7 = vsel %vm1480_vm4, %v1486_v53, %v1490_v60  ;;  %3966 = vmatprep.mubr.msk.bf16.mxu1 %vm462_vm3, %v341_v2  ;;  %v1492_v9 = vrot.slane %v4919_v61, 1  ;;  %v4933_v11 = vpack.c.bf16 %v261_v56, %v260_v51  ;;  %v4935_v12 = vpack.c.bf16 %v263_v58, %v262_v57  ;;  %v270_v53 = vld [vmem:[%s4855_s10 + $0xa0] sm:$0xff]  ;;  %v272_v1 = vld [vmem:[%s4855_s10 + $0xb0] sm:$0xff]  ;;  %v273_v2 = vld [vmem:[%s4855_s10 + $0xb8] sm:$0xff] }
  0x29   : > { %4115 = vmatmul.mubr.msk.bf16.vlgmr.msra.gmra.mrb[0].mxu0 %vm462_vm3, %v1491_v7  ;;  %v349_v15 = vsel %vm313_vm2, %v344_v62, %v348_v5  ;;  %3999 = vmatpush3.bf16.msra.mxu1 %v4842_v10  ;;  %v352_v16 = vor.u32 %v4919_v61, %v348_v5  ;;  %v4943_v18 = vpack.c.bf16 %v265_v0, %v264_v63 }
  0x2a   : > { %4151 = vmatpush3.bf16.msra.mxu0 %v4836_v8  ;;  %v1494_v19 = vor.u32 %v1493_v3, %v1492_v9  ;;  %v4947_v22 = vshll.u32 %v4933_v11, 16  ;;  %v4950_v23 = vshrl.u32 %v4933_v11, 16  ;;  %v4953_v24 = vshll.u32 %v4935_v12, 16  ;;  %4036 = vmatprep.subr.bf16.mxu1 %v4883_v30 }
  0x2b   : > { %v4957_v10 = vshrl.u32 %v4935_v12, 16  ;;  %v4960_v26 = vshll.u32 %v4943_v18, 16  ;;  %v4963_v8 = vshrl.u32 %v4943_v18, 16  ;;  %v4965_v27 = vpack.c.bf16 %v267_v14, %v266_v13  ;;  %4188 = vmatprep.subr.bf16.mxu0 %v4875_v25 }
  0x2c   : > { %v1495_v29 = vsel %vm1480_vm4, %v1490_v60, %v1494_v19  ;;  %v1496_v31 = vrot.slane %v4950_v23, 1  ;;  %v1497_v32 = vrot.slane %v4947_v22, 2  ;;  %v356_v35 = vrot.slane %v4947_v22, 1 }
  0x2d   : > { %4118 = vmatprep.mubr.msk.bf16.mxu0 %vm462_vm3, %v1495_v29  ;;  %v1500_v39 = vrot.slane %v4957_v10, 1  ;;  %v1501_v40 = vrot.slane %v4953_v24, 2  ;;  %v1504_v45 = vrot.slane %v4963_v8, 1  ;;  %v1505_v46 = vrot.slane %v4960_v26, 2 }
  0x2e   : > { %v1498_v43 = vor.u32 %v1497_v32, %v1496_v31  ;;  %v357_v44 = vsel %vm313_vm2, %v352_v16, %v356_v35  ;;  %v364_v48 = vrot.slane %v4953_v24, 1  ;;  %v4983_v49 = vshll.u32 %v4965_v27, 16 }
  0x2f   : > { %3967 = vmatmul.mubr.msk.bf16.gmra.mrb[4].mxu1 %vm462_vm3, %v349_v15  ;;  %v1502_v47 = vor.u32 %v1501_v40, %v1500_v39  ;;  %v360_v51 = vor.u32 %v4950_v23, %v356_v35  ;;  %v4989_v52 = vshrl.u32 %v4965_v27, 16  ;;  %v372_v58 = vrot.slane %v4960_v26, 1 }
  0x30   : > { %v1499_v50 = vsel %vm1480_vm4, %v1494_v19, %v1498_v43  ;;  %3970 = vmatprep.mubr.msk.bf16.mxu1 %vm462_vm3, %v357_v44  ;;  %v368_v57 = vor.u32 %v4957_v10, %v364_v48  ;;  %v1509_v59 = vrot.slane %v4983_v49, 2  ;;  %v1506_v60 = vor.u32 %v1505_v46, %v1504_v45 }
  0x31   : > { %4119 = vmatmul.mubr.msk.bf16.gmra.mrb[4].mxu0 %vm462_vm3, %v1499_v50  ;;  %v1503_v56 = vsel %vm1480_vm4, %v1498_v43, %v1502_v47  ;;  %v1508_v62 = vrot.slane %v4989_v52, 1  ;;  %v5000_v63 = vpack.c.bf16 %v269_v42, %v268_v41  ;;  %v5002_v0 = vpack.c.bf16 %v271_v54, %v270_v53  ;;  %v274_v50 = vld [vmem:[%s4855_s10 + $0xc0] sm:$0xff]  ;;  %v276_v54 = vld [vmem:[%s4855_s10 + $0xd0] sm:$0xff] }
  0x32   : > { %4122 = vmatprep.mubr.msk.bf16.mxu0 %vm462_vm3, %v1503_v56  ;;  %v365_v3 = vsel %vm313_vm2, %v360_v51, %v364_v48  ;;  %v373_v13 = vsel %vm313_vm2, %v368_v57, %v372_v58  ;;  %v1507_v16 = vsel %vm1480_vm4, %v1502_v47, %v1506_v60  ;;  %v5023_v31 = vpack.c.bf16 %v273_v2, %v272_v1  ;;  %v275_v51 = vld [vmem:[%s4855_s10 + $0xc8] sm:$0xff]  ;;  %v285_v1 = vld [vmem:[%s4855_s10 + $0x118] sm:$0xff] }
  0x33   : > { %v1510_v5 = vor.u32 %v1509_v59, %v1508_v62  ;;  %v5008_v7 = vshll.u32 %v5000_v63, 16  ;;  %v5011_v9 = vshrl.u32 %v5000_v63, 16  ;;  %v5015_v14 = vshll.u32 %v5002_v0, 16  ;;  %v284_v62 = vld [vmem:[%s4855_s10 + $0x110] sm:$0xff] }
  0x34   : > { %v5018_v15 = vshrl.u32 %v5002_v0, 16  ;;  %v380_v35 = vrot.slane %v4983_v49, 1  ;;  %v376_v41 = vor.u32 %v4963_v8, %v372_v58  ;;  %v5037_v45 = vshll.u32 %v5023_v31, 16 }
  0x35   : > { %v1512_v19 = vrot.slane %v5011_v9, 1  ;;  %v1513_v29 = vrot.slane %v5008_v7, 2  ;;  %v1511_v32 = vsel %vm1480_vm4, %v1506_v60, %v1510_v5  ;;  %v1517_v40 = vrot.slane %v5015_v14, 2  ;;  %v277_v60 = vld [vmem:[%s4855_s10 + $0xd8] sm:$0xff] }
  0x36   : > { %v1516_v39 = vrot.slane %v5018_v15, 1  ;;  %v384_v42 = vor.u32 %v4989_v52, %v380_v35  ;;  %v388_v43 = vrot.slane %v5008_v7, 1  ;;  %v5040_v46 = vshrl.u32 %v5023_v31, 16 }
  0x37   : > { %3971 = vmatmul.mubr.msk.bf16.gmra.mrb[8].mxu1 %vm462_vm3, %v365_v3  ;;  %v1514_v44 = vor.u32 %v1513_v29, %v1512_v19  ;;  %v381_v48 = vsel %vm313_vm2, %v376_v41, %v380_v35  ;;  %v396_v57 = vrot.slane %v5015_v14, 1  ;;  %v1521_v59 = vrot.slane %v5037_v45, 2  ;;  %v286_v35 = vld [vmem:[%s4855_s10 + $0x120] sm:$0xff] }
  0x38   : > { %3974 = vmatprep.mubr.msk.bf16.mxu1 %vm462_vm3, %v373_v13  ;;  %v1518_v47 = vor.u32 %v1517_v40, %v1516_v39  ;;  %v389_v53 = vsel %vm313_vm2, %v384_v42, %v388_v43  ;;  %v1520_v58 = vrot.slane %v5040_v46, 1  ;;  %v5056_v3 = vpack.c.bf16 %v275_v51, %v274_v50 }
  0x39   : > { %4123 = vmatmul.mubr.msk.bf16.gmra.mrb[8].mxu0 %vm462_vm3, %v1507_v16  ;;  %v1515_v56 = vsel %vm1480_vm4, %v1510_v5, %v1514_v44  ;;  %v392_v5 = vor.u32 %v5011_v9, %v388_v43  ;;  %v400_v13 = vor.u32 %v5018_v15, %v396_v57  ;;  %v404_v16 = vrot.slane %v5037_v45, 1 }
  0x3a   : > { %4126 = vmatprep.mubr.msk.bf16.mxu0 %vm462_vm3, %v1511_v32  ;;  %v1519_v2 = vsel %vm1480_vm4, %v1514_v44, %v1518_v47  ;;  %v5063_v19 = vpack.c.bf16 %v277_v60, %v276_v54  ;;  %v5065_v29 = vpack.c.bf16 %v285_v1, %v284_v62  ;;  %v5068_v32 = vor.u32 %v1521_v59, %v1520_v58  ;;  %v278_v44 = vld [vmem:[%s4855_s10 + $0xe0] sm:$0xff]  ;;  %v280_v58 = vld [vmem:[%s4855_s10 + $0xf0] sm:$0xff]  ;;  %v281_v59 = vld [vmem:[%s4855_s10 + $0xf8] sm:$0xff] }
  0x3b   : > { %v1839_v39 = vrot.slane %v4867_v20, 2  ;;  %v1840_v40 = vrot.slane %v4869_v21, 2  ;;  %v5074_v41 = vshll.u32 %v5056_v3, 16  ;;  %v397_v42 = vsel %vm313_vm2, %v392_v5, %v396_v57 }
  0x3c   : > { %6105 = vst [vmem:[#allocation6_spill] sm:$0xff] %v5068_v32  ;;  %v405_v43 = vsel %vm313_vm2, %v400_v13, %v404_v16  ;;  %v5081_v50 = vshll.u32 %v5065_v29, 16  ;;  %v5084_v51 = vshrl.u32 %v5056_v3, 16  ;;  %v5089_v54 = vpack.c.bf16 %v286_v35, %v286_v35 }
  0x3d   : > { %6106 = vst [vmem:[#allocation7_spill] sm:$0xff] %v5074_v41  ;;  %v1523_v57 = vsel %vm1480_vm4, %v1518_v47, %v5068_v32  ;;  %v1841_v62 = vsel %vm1838_vm5, %v1839_v39, %v1840_v40  ;;  %v412_v1 = vrot.slane %v5074_v41, 1  ;;  %v408_v47 = vor.u32 %v5040_v46, %v404_v16 }
  0x3e   : > { %6107 = vst [vmem:[#allocation8_spill] sm:$0xff] %v5084_v51  ;;  %6109 = vst [vmem:[#allocation10_spill] sm:$0xff] %v5089_v54  ;;  %v6070_v60 = vrot.slane %v5081_v50, 1  ;;  %v458_v5 = vshll.u32 %v5089_v54, 16  ;;  %v1844_v16 = vrot.slane %v4899_v38, 2 }
  0x3f   : > { %3975 = vmatmul.mubr.msk.bf16.gmra.mrb[12].mxu1 %vm462_vm3, %v381_v48  ;;  %v279_v48 = vld [vmem:[%s4855_s10 + $0xe8] sm:$0xff]  ;;  %v416_v39 = vor.u32 %v5084_v51, %v412_v1 }
  0x40   : > { %3978 = vmatprep.mubr.msk.bf16.mxu1 %vm462_vm3, %v389_v53  ;;  %v5087_v53 = vshll.u32 %v5063_v19, 16 }
  0x41   : > { %4127 = vmatmul.mubr.msk.bf16.gmra.mrb[12].mxu0 %vm462_vm3, %v1515_v56  ;;  %v5092_v56 = vshrl.u32 %v5065_v29, 16 }
  0x42   : > { %4130 = vmatprep.mubr.msk.bf16.mxu0 %vm462_vm3, %v1519_v2  ;;  %6108 = vst [vmem:[#allocation9_spill] sm:$0xff] %v5087_v53  ;;  %v5102_v2 = vpack.c.bf16 %v279_v48, %v278_v44  ;;  %v5113_v44 = vpack.c.bf16 %v281_v59, %v280_v58  ;;  %v460_v48 = vrot.slane %v458_v5, 1  ;;  %v282_v58 = vld [vmem:[%s4855_s10 + $0x100] sm:$0xff]  ;;  %v283_v59 = vld [vmem:[%s4855_s10 + $0x108] sm:$0xff] }
  0x43   : > { %6110 = vst [vmem:[#allocation11_spill] sm:$0xff] %v5092_v56  ;;  %v456_v13 = vor.u32 %v5092_v56, %v6070_v60  ;;  %v5126_v56 = vshrl.u32 %v5063_v19, 16 }
  0x44   : > { %v5119_v32 = vshll.u32 %v5102_v2, 16 }
  0x45   : > { %v5122_v60 = vsel %vm313_vm2, %v456_v13, %v460_v48  ;;  %6112 = vst [vmem:[#allocation13_spill] sm:$0xff] %v5126_v56  ;;  %v5138_v13 = vshll.u32 %v5113_v44, 16 }
  0x46   : > { %6111 = vst [vmem:[#allocation12_spill] sm:$0xff] %v5119_v32  ;;  %v428_v41 = vrot.slane %v5119_v32, 1 }
  0x47   : > { %3979 = vmatmul.mubr.msk.bf16.gmra.mrb[16].mxu1 %vm462_vm3, %v397_v42  ;;  %v420_v42 = vrot.slane %v5087_v53, 1  ;;  %v5135_v53 = vshrl.u32 %v5102_v2, 16  ;;  %6114 = vst [vmem:[#allocation15_spill] sm:$0xff] %v5138_v13 }
  0x48   : > { %3982 = vmatprep.mubr.msk.bf16.mxu1 %vm462_vm3, %v405_v43  ;;  %v1842_v43 = vrot.slane %v4879_v28, 2 }
  0x49   : > { %4131 = vmatmul.mubr.msk.bf16.gmra.mrb[16].mxu0 %vm462_vm3, %v1523_v57  ;;  %v413_v57 = vsel %vm313_vm2, %v408_v47, %v412_v1  ;;  %v421_v5 = vsel %vm313_vm2, %v416_v39, %v420_v42  ;;  %6113 = vst [vmem:[#allocation14_spill] sm:$0xff] %v5135_v53  ;;  %v287_v47 = vld [vmem:[%s4855_s10 + $0x128] sm:$0xff]  ;;  %v5149_v39 = vpack.c.bf16 %v283_v59, %v282_v58  ;;  %v1846_v58 = vrot.slane %v4933_v11, 2  ;;  %v5168_v59 = vld [vmem:[%s4855_s10 + $0x130] sm:$0xff] }
  0x4a   : > { %4152 = vmatprep.mubr.msk.bf16.mxu0 %vm462_vm3, %v1841_v62  ;;  %v3730_v62 = vld [vmem:[%s6063_s1 + $0xe] sm:$0x3]  ;;  %v5141_v1 = vsel %vm1838_vm5, %v1840_v40, %v1842_v43  ;;  %v5146_v48 = vsel %vm1838_vm5, %v1842_v43, %v1844_v16  ;;  %v424_v54 = vor.u32 %v5126_v56, %v420_v42  ;;  %v432_v40 = vor.u32 %v5135_v53, %v428_v41 }
  0x4b   : > { %v5152_v51 = vand.u32 %v3730_v62, %v4825_v4  ;;  %v5160_v43 = vpack.c.bf16 %v287_v47, %v286_v35  ;;  %v1848_v42 = vrot.slane %v4935_v12, 2  ;;  %v5172_v62 = vshll.u32 %v5149_v39, 16 }
  0x4c   : > { %v5176_v35 = vpack.c.bf16 %v289_v6, %v5168_v59  ;;  %v5191_v56 = vsel %vm1838_vm5, %v1844_v16, %v1846_v58 }
  0x4d   : > { %6115 = vst [vmem:[#allocation16_spill] sm:$0xff] %v5160_v43  ;;  %6116 = vst [vmem:[#allocation17_spill] sm:$0xff] %v5172_v62  ;;  %v5187_v32 = vrot.slane %v5160_v43, 2  ;;  %v5195_v6 = vsel %vm1838_vm5, %v1846_v58, %v1848_v42  ;;  %v2381_v58 = vrot.slane %v4891_v34, 2  ;;  %v2388_v34 = vrot.slane %v4919_v61, 2 }
  0x4e   : > { %6117 = vst [vmem:[#allocation18_spill] sm:$0xff] %v5176_v35  ;;  %v6092_v53 = vrot.slane %v5176_v35, 2  ;;  %6120 = vst [vmem:[#allocation21_spill] sm:$0xff] %v5195_v6  ;;  %v6122_v35 = vrot.slane %v5081_v50, 1  ;;  %v1854_v61 = vrot.slane %v5000_v63, 2 }
  0x4f   : > { %3983 = vmatmul.mubr.msk.bf16.gmra.mrb[20].mxu1 %vm462_vm3, %v413_v57  ;;  %v436_v57 = vrot.slane %v5138_v13, 1  ;;  %v5184_v13 = vshrl.u32 %v5149_v39, 16 }
  0x50   : > { %3986 = vmatprep.mubr.msk.bf16.mxu1 %vm462_vm3, %v421_v5  ;;  %v429_v5 = vsel %vm313_vm2, %v424_v54, %v428_v41  ;;  %v444_v41 = vrot.slane %v5172_v62, 1  ;;  %v5202_v54 = vsel %vm1838_vm5, %v5187_v32, %v6092_v53  ;;  %v1850_v62 = vrot.slane %v4943_v18, 2 }
  0x51   : > { %4153 = vmatmul.mubr.msk.bf16.vlgmr.msra.gmra.mrb[0].mxu0 %vm462_vm3, %v5141_v1  ;;  %v437_v47 = vsel %vm313_vm2, %v432_v40, %v436_v57  ;;  %6119 = vst [vmem:[#allocation20_spill] sm:$0xff] %v5184_v13  ;;  %6121 = vst [vmem:[#allocation22_spill] sm:$0xff] %v5202_v54  ;;  %v2384_v53 = vrot.slane %v4897_v37, 2 }
  0x52   : > { %4189 = vmatpush3.bf16.msra.mxu0 %v4875_v25  ;;  %4156 = vmatprep.mubr.msk.bf16.mxu0 %vm462_vm3, %v5146_v48  ;;  %v5180_v25 = vshrl.u32 %v5113_v44, 16  ;;  %v448_v16 = vor.u32 %v5184_v13, %v444_v41 }
  0x53   : > { %4226 = vmatprep.subr.bf16.mxu0 %v5152_v51 }
  0x54   : > { %6118 = vst [vmem:[#allocation19_spill] sm:$0xff] %v5180_v25  ;;  %v440_v40 = vor.u32 %v5180_v25, %v436_v57  ;;  %v1852_v57 = vrot.slane %v4965_v27, 2  ;;  %v453_v54 = vsel %vm313_vm2, %v448_v16, %v6122_v35  ;;  %v2396_v35 = vrot.slane %v4957_v10, 2  ;;  %v3654_v16 = vld [vmem:[%s6063_s1 + $0x6] sm:$0x3] }
  0x55   : > { %v2400_v10 = vrot.slane %v4963_v8, 2  ;;  %v5277_v8 = vand.u32 %v3654_v16, %v4825_v4 }
  0x56   : > { %v445_v43 = vsel %vm313_vm2, %v440_v40, %v444_v41  ;;  %v5231_v41 = vsel %vm1838_vm5, %v1850_v62, %v1852_v57  ;;  %v2401_v40 = vrot.slane %v4960_v26, 3 }
  0x57   : > { %3987 = vmatmul.mubr.msk.bf16.gmra.mrb[24].mxu1 %vm462_vm3, %v429_v5  ;;  %v2382_v5 = vrot.slane %v4888_v33, 3  ;;  %v2389_v33 = vrot.slane %v4911_v55, 3 }
  0x58   : > { %3990 = vmatprep.mubr.msk.bf16.mxu1 %vm462_vm3, %v437_v47  ;;  %v2385_v47 = vrot.slane %v4894_v36, 3 }
  0x59   : > { %4157 = vmatmul.mubr.msk.bf16.gmra.mrb[4].mxu0 %vm462_vm3, %v5191_v56  ;;  %v2383_v25 = vor.u32 %v2382_v5, %v2381_v58  ;;  %v2390_v37 = vor.u32 %v2389_v33, %v2388_v34  ;;  %v1860_v58 = vrot.slane %v5056_v3, 2  ;;  %v2402_v5 = vor.u32 %v2401_v40, %v2400_v10 }
  0x5a   : > { %4160 = vmatprep.mubr.msk.bf16.mxu0 %vm462_vm3, %v5195_v6  ;;  %v2386_v13 = vor.u32 %v2385_v47, %v2384_v53  ;;  %v5224_v6 = vsel %vm1838_vm5, %v1848_v42, %v1850_v62  ;;  %v2392_v53 = vrot.slane %v4950_v23, 2  ;;  %v1856_v42 = vrot.slane %v5002_v0, 2 }
  0x5b   : > { %v2404_v47 = vrot.slane %v4989_v52, 2  ;;  %v2408_v52 = vrot.slane %v5011_v9, 2  ;;  %v1866_v10 = vrot.slane %v5113_v44, 2  ;;  %v1868_v40 = vrot.slane %v5149_v39, 2 }
  0x5c   : > { %v5227_v36 = vsel %vm2380_vm6, %v2383_v25, %v2386_v13  ;;  %v5235_v55 = vsel %vm2380_vm6, %v2386_v13, %v2390_v37  ;;  %v2397_v13 = vrot.slane %v4953_v24, 3  ;;  %v5248_v25 = vsel %vm1838_vm5, %v1852_v57, %v1854_v61 }
  0x5d   : > { %v5256_v23 = vsel %vm1838_vm5, %v1854_v61, %v1856_v42  ;;  %v2405_v57 = vrot.slane %v4983_v49, 3  ;;  %v2409_v61 = vrot.slane %v5008_v7, 3 }
  0x5f   : > { %3991 = vmatmul.mubr.msk.bf16.gmra.mrb[28].mxu1 %vm462_vm3, %v445_v43  ;;  %v2393_v43 = vrot.slane %v4947_v22, 3  ;;  %v2398_v22 = vor.u32 %v2397_v13, %v2396_v35  ;;  %v2406_v33 = vor.u32 %v2405_v57, %v2404_v47  ;;  %v5357_v47 = vpack.c.bf16 %v5168_v59, %v5168_v59 }
  0x60   : > { %3994 = vmatprep.mubr.msk.bf16.mxu1 %vm462_vm3, %v453_v54 }
  0x61   : > { %4161 = vmatmul.mubr.msk.bf16.gmra.mrb[8].mxu0 %vm462_vm3, %v5224_v6  ;;  %v2394_v62 = vor.u32 %v2393_v43, %v2392_v53  ;;  %v5280_v26 = vsel %vm2380_vm6, %v2398_v22, %v2402_v5  ;;  %v5294_v49 = vsel %vm2380_vm6, %v2402_v5, %v2406_v33  ;;  %v1862_v53 = vrot.slane %v5063_v19, 2 }
  0x62   : > { %4164 = vmatprep.mubr.msk.bf16.mxu0 %vm462_vm3, %v5231_v41  ;;  %v1864_v43 = vrot.slane %v5102_v2, 2 }
  0x63   : > { %v5251_v54 = vsel %vm2380_vm6, %v2390_v37, %v2394_v62  ;;  %v5263_v24 = vsel %vm2380_vm6, %v2394_v62, %v2398_v22  ;;  %v2413_v62 = vrot.slane %v5015_v14, 3  ;;  %v5311_v13 = vsel %vm1838_vm5, %v1860_v58, %v1862_v53 }
  0x64   : > { %v5316_v7 = vsel %vm1838_vm5, %v1862_v53, %v1864_v43  ;;  %v2416_v14 = vrot.slane %v5040_v46, 2  ;;  %v2417_v22 = vrot.slane %v5037_v45, 3  ;;  %v5343_v45 = vsel %vm1838_vm5, %v1866_v10, %v1868_v40 }
  0x65   : > { %v1870_v46 = vrot.slane %v5065_v29, 2  ;;  %v950_v53 = vrot.slane %v4935_v12, 1 }
  0x67   : > { %3995 = vmatmul.mubr.msk.bf16.gmra.mrb[32].mxu1 %vm462_vm3, %v5122_v60  ;;  %v1858_v60 = vrot.slane %v5023_v31, 2  ;;  %v5353_v5 = vsel %vm1838_vm5, %v1868_v40, %v1870_v46  ;;  %v5363_v57 = vsel %vm1838_vm5, %v1870_v46, %v5187_v32  ;;  %v3131_v40 = vld [vmem:[%s6065_s3 + $0x30] sm:$0xff] }
  0x68   : > { %4000 = vmatprep.mubr.msk.bf16.mxu1 %vm462_vm3, %v4863_v17 }
  0x69   : > { %4165 = vmatmul.mubr.msk.bf16.gmra.mrb[12].mxu0 %vm462_vm3, %v5248_v25  ;;  %v5283_v34 = vsel %vm1838_vm5, %v1856_v42, %v1858_v60  ;;  %v5288_v37 = vsel %vm1838_vm5, %v1858_v60, %v1860_v58  ;;  %v2412_v42 = vrot.slane %v5018_v15, 2  ;;  %v5331_v60 = vor.u32 %v2417_v22, %v2416_v14 }
  0x6a   : > { %4168 = vmatprep.mubr.msk.bf16.mxu0 %vm462_vm3, %v5256_v23  ;;  %v5338_v58 = vsel %vm1838_vm5, %v1864_v43, %v1866_v10  ;;  %v952_v43 = vrot.slane %v4943_v18, 1  ;;  %v954_v14 = vrot.slane %v4965_v27, 1  ;;  %v956_v22 = vrot.slane %v5000_v63, 1  ;;  %v3130_v10 = vld [vmem:[%s6065_s3 + $0x28] sm:$0xff] }
  0x6b   : > { %v2414_v9 = vor.u32 %v2413_v62, %v2412_v42  ;;  %v3126_v42 = vld [vmem:[%s6065_s3 + $0x8] sm:$0xff]  ;;  %v3128_v62 = vld [vmem:[%s6065_s3 + $0x18] sm:$0xff] }
  0x6c   : > { %v5501_v46 = vsel %vm938_vm7, %v952_v43, %v954_v14 }
  0x6d   : > { %v5335_v16 = vsel %vm2380_vm6, %v2414_v9, %v5331_v60 }
  0x6f   : > { %4001 = vmatmul.mubr.msk.bf16.vlgmr.msra.gmra.mrb[0].mxu1 %vm462_vm3, %v4867_v20 }
  0x70   : > { %4004 = vmatprep.mubr.msk.bf16.mxu1 %vm462_vm3, %v4869_v21  ;;  %4037 = vmatpush3.bf16.msra.mxu1 %v4883_v30  ;;  %v2410_v30 = vor.u32 %v2409_v61, %v2408_v52  ;;  %v3749_v52 = vld [vmem:[%s6063_s1 + $0x10] sm:$0x3]  ;;  %v4731_v61 = vmov 0  }
  0x71   : > { %4169 = vmatmul.mubr.msk.bf16.gmra.mrb[16].mxu0 %vm462_vm3, %v5283_v34  ;;  %4074 = vmatprep.subr.bf16.mxu1 %v5277_v8 }
  0x72   : > { %4172 = vmatprep.mubr.msk.bf16.mxu0 %vm462_vm3, %v5288_v37  ;;  %v5308_v35 = vsel %vm2380_vm6, %v2406_v33, %v2410_v30  ;;  %v5321_v15 = vsel %vm2380_vm6, %v2410_v30, %v2414_v9  ;;  %v1874_v33 = vrot.slane %v5357_v47, 2  ;;  %4656 = vset.pattern.permute.xlu0 %v4731_v61  ;;  %v3127_v30 = vld [vmem:[%s6065_s3 + $0x10] sm:$0xff]  ;;  %v3129_v9 = vld [vmem:[%s6065_s3 + $0x20] sm:$0xff] }
  0x73   : > { %4657 = vset.pattern.permute.xlu1 %v4731_v61 }
  0x74   : > { %v1875_v59 = vsel %vm1838_vm5, %v5187_v32, %v1874_v33  ;;  %v5387_v32 = vand.u32 %v3749_v52, %v4825_v4  ;;  %v6123_v4 = vld [vmem:[#allocation21_spill] sm:$0xff]  ;;  %3173 = vperm.xlu1 %4657, %v3127_v30  }
  0x75   : > { %v3133_v33 = vld [vmem:[%s6065_s3 + $0x40] sm:$0xff] }
  0x77   : > { %4005 = vmatmul.mubr.msk.bf16.gmra.mrb[4].mxu1 %vm462_vm3, %v4879_v28 }
  0x78   : > { %4008 = vmatprep.mubr.msk.bf16.mxu1 %vm462_vm3, %v4899_v38  ;;  %3178 = vperm.xlu1 %4657, %v3128_v62   ;;  %v962_v62 = vrot.slane %v5056_v3, 1 }
  0x79   : > { %4173 = vmatmul.mubr.msk.bf16.gmra.mrb[20].mxu0 %vm462_vm3, %v5311_v13 }
  0x7a   : > { %4176 = vmatprep.mubr.msk.bf16.mxu0 %vm462_vm3, %v5316_v7 }
  0x7c   : > { %3188 = vperm.xlu1 %4657, %v3130_v10  }
  0x7f   : > { %4009 = vmatmul.mubr.msk.bf16.gmra.mrb[8].mxu1 %vm462_vm3, %v4933_v11 }
  0x80   : > { %4012 = vmatprep.mubr.msk.bf16.mxu1 %vm462_vm3, %v4935_v12 }
  0x81   : > { %4177 = vmatmul.mubr.msk.bf16.gmra.mrb[24].mxu0 %vm462_vm3, %v5338_v58 }
  0x82   : > { %4180 = vmatprep.mubr.msk.bf16.mxu0 %vm462_vm3, %v5343_v45 }
  0x87   : > { %4013 = vmatmul.mubr.msk.bf16.gmra.mrb[12].mxu1 %vm462_vm3, %v4943_v18 }
  0x88   : > { %4016 = vmatprep.mubr.msk.bf16.mxu1 %vm462_vm3, %v4965_v27 }
  0x89   : > { %4181 = vmatmul.mubr.msk.bf16.gmra.mrb[28].mxu0 %vm462_vm3, %v5353_v5 }
  0x8a   : > { %4184 = vmatprep.mubr.msk.bf16.mxu0 %vm462_vm3, %v5363_v57 }
  0x8f   : > { %4017 = vmatmul.mubr.msk.bf16.gmra.mrb[16].mxu1 %vm462_vm3, %v5000_v63 }
  0x90   : > { %4020 = vmatprep.mubr.msk.bf16.mxu1 %vm462_vm3, %v5002_v0 }
  0x91   : > { %4185 = vmatmul.mubr.msk.bf16.gmra.mrb[32].mxu0 %vm462_vm3, %v1875_v59  ;;  %v5507_v59 = vsel %vm938_vm7, %v954_v14, %v956_v22  ;;  %v3138_v14 = vld [vmem:[%s6065_s3 + $0x68] sm:$0xff] }
  0x92   : > { %4190 = vmatprep.mubr.msk.bf16.mxu0 %vm462_vm3, %v5141_v1 }
  0x97   : > { %4021 = vmatmul.mubr.msk.bf16.gmra.mrb[20].mxu1 %vm462_vm3, %v5023_v31 }
  0x98   : > { %4024 = vmatprep.mubr.msk.bf16.mxu1 %vm462_vm3, %v5056_v3 }
  0x99   : > { %4191 = vmatmul.mubr.msk.bf16.vlgmr.msra.gmra.mrb[0].mxu0 %vm462_vm3, %v5146_v48  ;;  %v942_v48 = vrot.slane %v4869_v21, 1 }
  0x9a   : > { %4227 = vmatpush3.bf16.msra.mxu0 %v5152_v51  ;;  %4194 = vmatprep.mubr.msk.bf16.mxu0 %vm462_vm3, %v5191_v56  ;;  %v939_v51 = vrot.slane %v4863_v17, 1  ;;  %v940_v56 = vrot.slane %v4867_v20, 1  ;;  %v944_v17 = vrot.slane %v4879_v28, 1 }
  0x9b   : > { %4264 = vmatprep.subr.bf16.mxu0 %v5387_v32 }
  0x9c   : > { %v941_v1 = vsel %vm938_vm7, %v939_v51, %v940_v56  ;;  %v5426_v20 = vsel %vm938_vm7, %v940_v56, %v942_v48  ;;  %v3134_v51 = vld [vmem:[%s6065_s3 + $0x48] sm:$0xff]  ;;  %v3135_v56 = vld [vmem:[%s6065_s3 + $0x50] sm:$0xff] }
  0x9f   : > { %4025 = vmatmul.mubr.msk.bf16.gmra.mrb[24].mxu1 %vm462_vm3, %v5063_v19 }
  0xa0   : > { %4028 = vmatprep.mubr.msk.bf16.mxu1 %vm462_vm3, %v5102_v2 }
  0xa1   : > { %4195 = vmatmul.mubr.msk.bf16.gmra.mrb[4].mxu0 %vm462_vm3, %v6123_v4  ;;  %v960_v4 = vrot.slane %v5023_v31, 1 }
  0xa2   : > { %4198 = vmatprep.mubr.msk.bf16.mxu0 %vm462_vm3, %v5224_v6  ;;  %v5429_v6 = vsel %vm938_vm7, %v942_v48, %v944_v17 }
  0xa7   : > { %4029 = vmatmul.mubr.msk.bf16.gmra.mrb[28].mxu1 %vm462_vm3, %v5113_v44 }
  0xa8   : > { %4032 = vmatprep.mubr.msk.bf16.mxu1 %vm462_vm3, %v5149_v39 }
  0xa9   : > { %4199 = vmatmul.mubr.msk.bf16.gmra.mrb[8].mxu0 %vm462_vm3, %v5231_v41  ;;  %v946_v41 = vrot.slane %v4899_v38, 1 }
  0xaa   : > { %4202 = vmatprep.mubr.msk.bf16.mxu0 %vm462_vm3, %v5248_v25  ;;  %v948_v25 = vrot.slane %v4933_v11, 1 }
  0xaf   : > { %4033 = vmatmul.mubr.msk.bf16.gmra.mrb[32].mxu1 %vm462_vm3, %v5065_v29 }
  0xb0   : > { %4038 = vmatprep.mubr.msk.bf16.mxu1 %vm462_vm3, %v941_v1  ;;  %v6125_v1 = vld [vmem:[#allocation22_spill] sm:$0xff] }
  0xb1   : > { %4203 = vmatmul.mubr.msk.bf16.gmra.mrb[12].mxu0 %vm462_vm3, %v5256_v23  ;;  %v6124_v23 = vld [vmem:[#allocation5_spill] sm:$0xff] }
  0xb2   : > { %4206 = vmatprep.mubr.msk.bf16.mxu0 %vm462_vm3, %v5283_v34  ;;  %v3125_v34 = vld [vmem:[%s6065_s3] sm:$0xff] }
  0xb3   : > { %3163 = vperm.xlu0 %4656, %v3125_v34   ;;  %v6126_v34 = vld [vmem:[#allocation18_spill] sm:$0xff] }
  0xb4   : > { %v6127_v61 = vrot.slane %v6126_v34, 2 }
  0xb7   : > { %4039 = vmatmul.mubr.msk.bf16.vlgmr.msra.gmra.mrb[0].mxu1 %vm462_vm3, %v5426_v20  ;;  %3168 = vperm.xlu0 %4656, %v3126_v42  }
  0xb8   : > { %4042 = vmatprep.mubr.msk.bf16.mxu1 %vm462_vm3, %v5429_v6  ;;  %4075 = vmatpush3.bf16.msra.mxu1 %v5277_v8  ;;  %v5447_v8 = vsel %vm938_vm7, %v944_v17, %v946_v41 }
  0xb9   : > { %4207 = vmatmul.mubr.msk.bf16.gmra.mrb[16].mxu0 %vm462_vm3, %v5288_v37  ;;  %4322 = vmatprep.subr.bf16.mxu1 %v6124_v23  ;;  %v5450_v37 = vsel %vm938_vm7, %v946_v41, %v948_v25  ;;  %v3137_v41 = vld [vmem:[%s6065_s3 + $0x60] sm:$0xff] }
  0xba   : > { %4210 = vmatprep.mubr.msk.bf16.mxu0 %vm462_vm3, %v5311_v13  ;;  %v5472_v13 = vsel %vm938_vm7, %v948_v25, %v950_v53 }
  0xbb   : > { %3183 = vperm.xlu0 %4656, %v3129_v9   ;;  %v964_v9 = vrot.slane %v5063_v19, 1 }
  0xbf   : > { %4043 = vmatmul.mubr.msk.bf16.gmra.mrb[4].mxu1 %vm462_vm3, %v5447_v8  ;;  %3193 = vperm.xlu0 %4656, %v3131_v40  }
  0xc0   : > { %4046 = vmatprep.mubr.msk.bf16.mxu1 %vm462_vm3, %v5450_v37 }
  0xc1   : > { %4211 = vmatmul.mubr.msk.bf16.gmra.mrb[20].mxu0 %vm462_vm3, %v5316_v7  ;;  %v5478_v7 = vsel %vm938_vm7, %v950_v53, %v952_v43  ;;  %v6128_v43 = vld [vmem:[#allocation16_spill] sm:$0xff] }
  0xc2   : > { %4214 = vmatprep.mubr.msk.bf16.mxu0 %vm462_vm3, %v5338_v58  ;;  %v290_v58 = vld [vmem:[%s4855_s10 + $0x140] sm:$0xff]  ;;  %v1549_v30 = vshrl.u32 %v6128_v43, 16  ;;  %v1552_v42 = vshll.u32 %v6128_v43, 16  ;;  %s3777_s10 = sshll.u32 %s4791_s25, 4  ;;  %s4666_s25 = scalar_lea.vmem %s6022_s28, 16 }
  0xc3   : > { %v5509_v52 = vpack.c.bf16 %v290_v58, %v290_v58  ;;  %3203 = vperm.xlu0 %4656, %v3133_v33   ;;  %v3140_v58 = vld [vmem:[%s6065_s3 + $0x78] sm:$0xff]  ;;  %v5570_v33 = vsel %vm938_vm7, %v960_v4, %v962_v62  ;;  %s6020_s11 = scalar_lea.hbm %s6068_s6, %s3777_s10  ;;  %p4667_p11 = scmp.ne.s32.totalorder %s6022_s28, %s4666_s25 }
  0xc4   : > { %v1551_v10 = vrot.slane %v1549_v30, 1  ;;  %v1554_v40 = vrot.slane %v1552_v42, 2  ;;  %p4674_p1 = scmp.lt.s32.totalorder %s4672_s15, %s4666_s25 }
  0xc5   : > { %v2154_v48 = vrot.slane %v5509_v52, 2  ;;  %p4668_p12 = pnand %p4667_p11, %p4808_p5 }
  0xc6   : > { %p4675_p2 = por %p4674_p1, %p4673_p0 }
  0xc7   : > { %4047 = vmatmul.mubr.msk.bf16.gmra.mrb[8].mxu1 %vm462_vm3, %v5472_v13  ;;  %3213 = vperm.xlu0 %4656, %v3135_v56   ;;  %v2155_v53 = vsel %vm1838_vm5, %v6127_v61, %v2154_v48  ;;  %v3142_v56 = vld [vmem:[%s6065_s3 + $0x88] sm:$0xff]  ;;  %p4669_p13 = pneg %p4668_p12 }
  0xc8   : > { %4050 = vmatprep.mubr.msk.bf16.mxu1 %vm462_vm3, %v5478_v7  ;;  %v3146_v61 = vld [vmem:[%s6065_s3 + $0xa8] sm:$0xff] }
  0xc9   : > { %4215 = vmatmul.mubr.msk.bf16.gmra.mrb[24].mxu0 %vm462_vm3, %v5343_v45  ;;  %v3132_v45 = vld [vmem:[%s6065_s3 + $0x38] sm:$0xff]  ;;  %p4676_p3 = pnand %p4675_p2, %p4669_p13 }
  0xca   : > { %4218 = vmatprep.mubr.msk.bf16.mxu0 %vm462_vm3, %v5353_v5  ;;  %3198 = vperm.xlu1 %4657, %v3132_v45   ;;  %v958_v5 = vrot.slane %v5002_v0, 1  ;;  %v5567_v45 = vor.u32 %v1554_v40, %v1551_v10  ;;  %v3150_v10 = vld [vmem:[%s6065_s3 + $0xc8] sm:$0xff]  ;;  %v3151_v40 = vld [vmem:[%s6065_s3 + $0xd0] sm:$0xff] }
  0xcb   : > { %3223 = vperm.xlu0 %4656, %v3137_v41   ;;  %v3145_v41 = vld [vmem:[%s6065_s3 + $0xa0] sm:$0xff] }
  0xcc   : > { %v5532_v17 = vsel %vm938_vm7, %v956_v22, %v958_v5  ;;  %v5538_v25 = vsel %vm938_vm7, %v958_v5, %v960_v4  ;;  %v3139_v22 = vld [vmem:[%s6065_s3 + $0x70] sm:$0xff]  ;;  %v3141_v5 = vld [vmem:[%s6065_s3 + $0x80] sm:$0xff]  ;;  %v968_v4 = vrot.slane %v5113_v44, 1 }
  0xce   : > { %3208 = vperm.xlu1 %4657, %v3134_v51   ;;  %v5576_v51 = vsel %vm938_vm7, %v962_v62, %v964_v9 }
  0xcf   : > { %4051 = vmatmul.mubr.msk.bf16.gmra.mrb[12].mxu1 %vm462_vm3, %v5501_v46  ;;  %3233 = vperm.xlu0 %4656, %v3139_v22  }
  0xd0   : > { %4054 = vmatprep.mubr.msk.bf16.mxu1 %vm462_vm3, %v5507_v59 }
  0xd1   : > { %4219 = vmatmul.mubr.msk.bf16.gmra.mrb[28].mxu0 %vm462_vm3, %v5363_v57  ;;  %v3136_v57 = vld [vmem:[%s6065_s3 + $0x58] sm:$0xff] }
  0xd2   : > { %4222 = vmatprep.mubr.msk.bf16.mxu0 %vm462_vm3, %v6125_v1  ;;  %3218 = vperm.xlu1 %4657, %v3136_v57   ;;  %v3143_v1 = vld [vmem:[%s6065_s3 + $0x90] sm:$0xff] }
  0xd3   : > { %3243 = vperm.xlu0 %4656, %v3141_v5   ;;  %v3152_v5 = vld [vmem:[%s6065_s3 + $0xd8] sm:$0xff] }
  0xd6   : > { %3228 = vperm.xlu1 %4657, %v3138_v14   ;;  %v3149_v14 = vld [vmem:[%s6065_s3 + $0xc0] sm:$0xff] }
  0xd7   : > { %4055 = vmatmul.mubr.msk.bf16.gmra.mrb[16].mxu1 %vm462_vm3, %v5532_v17  ;;  %3253 = vperm.xlu0 %4656, %v3143_v1  }
  0xd8   : > { %4058 = vmatprep.mubr.msk.bf16.mxu1 %vm462_vm3, %v5538_v25 }
  0xd9   : > { %4223 = vmatmul.mubr.msk.bf16.gmra.mrb[32].mxu0 %vm462_vm3, %v2155_v53  ;;  %v3147_v53 = vld [vmem:[%s6065_s3 + $0xb0] sm:$0xff] }
  0xda   : > { %4228 = vmatprep.mubr.msk.bf16.mxu0 %vm462_vm3, %v5227_v36  ;;  %3238 = vperm.xlu1 %4657, %v3140_v58   ;;  %v966_v36 = vrot.slane %v5102_v2, 1 }
  0xdb   : > { %3263 = vperm.xlu0 %4656, %v3145_v41   ;;  %v6133_v41 = vld [vmem:[#allocation9_spill] sm:$0xff] }
  0xdc   : > { %v5596_v48 = vsel %vm938_vm7, %v964_v9, %v966_v36  ;;  %v5602_v57 = vsel %vm938_vm7, %v966_v36, %v968_v4  ;;  %v6130_v36 = vld [vmem:[#allocation8_spill] sm:$0xff] }
  0xde   : > { %3248 = vperm.xlu1 %4657, %v3142_v56   ;;  %v6131_v56 = vld [vmem:[#allocation7_spill] sm:$0xff] }
  0xdf   : > { %4059 = vmatmul.mubr.msk.bf16.gmra.mrb[20].mxu1 %vm462_vm3, %v5570_v33  ;;  %3273 = vperm.xlu0 %4656, %v3147_v53   ;;  %v2421_v1 = vrot.slane %v6131_v56, 3  ;;  %v3155_v53 = vld [vmem:[%s6065_s3 + $0xf0] sm:$0xff] }
  0xe0   : > { %4062 = vmatprep.mubr.msk.bf16.mxu1 %vm462_vm3, %v5576_v51 }
  0xe1   : > { %4229 = vmatmul.mubr.msk.bf16.vlgmr.msra.gmra.mrb[0].mxu0 %vm462_vm3, %v5235_v55  ;;  %v3144_v55 = vld [vmem:[%s6065_s3 + $0x98] sm:$0xff] }
  0xe2   : > { %4265 = vmatpush3.bf16.msra.mxu0 %v5387_v32  ;;  %4232 = vmatprep.mubr.msk.bf16.mxu0 %vm462_vm3, %v5251_v54  ;;  %v970_v54 = vrot.slane %v5149_v39, 1  ;;  %v5615_v32 = vrot.slane %v5065_v29, 1 }
  0xe3   : > { %3258 = vperm.xlu1 %4657, %v3144_v55   ;;  %3283 = vperm.xlu0 %4656, %v3149_v14  }
  0xe4   : > { %v5626_v62 = vsel %vm938_vm7, %v968_v4, %v970_v54  ;;  %v5633_v9 = vsel %vm938_vm7, %v970_v54, %v5615_v32  ;;  %v2420_v4 = vrot.slane %v6130_v36, 2  ;;  %v2425_v54 = vrot.slane %v6133_v41, 3 }
  0xe7   : > { %4063 = vmatmul.mubr.msk.bf16.gmra.mrb[24].mxu1 %vm462_vm3, %v5596_v48  ;;  %3268 = vperm.xlu1 %4657, %v3146_v61   ;;  %v3154_v61 = vld [vmem:[%s6065_s3 + $0xe8] sm:$0xff] }
  0xe8   : > { %4066 = vmatprep.mubr.msk.bf16.mxu1 %vm462_vm3, %v5602_v57  ;;  %3293 = vperm.xlu0 %4656, %v3151_v40  }
  0xe9   : > { %4233 = vmatmul.mubr.msk.bf16.gmra.mrb[4].mxu0 %vm462_vm3, %v5263_v24  ;;  %v3148_v24 = vld [vmem:[%s6065_s3 + $0xb8] sm:$0xff] }
  0xea   : > { %4236 = vmatprep.mubr.msk.bf16.mxu0 %vm462_vm3, %v5280_v26  ;;  %v6129_v26 = vld [vmem:[#allocation10_spill] sm:$0xff] }
  0xeb   : > { %3278 = vperm.xlu1 %4657, %v3148_v24   ;;  %v974_v22 = vrot.slane %v6129_v26, 1  ;;  %v2422_v24 = vor.u32 %v2421_v1, %v2420_v4  ;;  %v6137_v4 = vld [vmem:[#allocation15_spill] sm:$0xff] }
  0xec   : > { %v2433_v1 = vrot.slane %v6137_v4, 3 }
  0xed   : > { %v975_v58 = vsel %vm938_vm7, %v5615_v32, %v974_v22  ;;  %v2423_v26 = vsel %vm2380_vm6, %v5331_v60, %v2422_v24  ;;  %v6134_v22 = vld [vmem:[#allocation14_spill] sm:$0xff] }
  0xee   : > { %v3158_v60 = vld [vmem:[%s6065_s3 + $0x108] sm:$0xff] }
  0xef   : > { %4067 = vmatmul.mubr.msk.bf16.gmra.mrb[28].mxu1 %vm462_vm3, %v5626_v62  ;;  %3288 = vperm.xlu1 %4657, %v3150_v10   ;;  %v6135_v10 = vld [vmem:[#allocation12_spill] sm:$0xff] }
  0xf0   : > { %4070 = vmatprep.mubr.msk.bf16.mxu1 %vm462_vm3, %v5633_v9  ;;  %v2429_v40 = vrot.slane %v6135_v10, 3 }
  0xf1   : > { %4237 = vmatmul.mubr.msk.bf16.gmra.mrb[8].mxu0 %vm462_vm3, %v5294_v49  ;;  %v3153_v49 = vld [vmem:[%s6065_s3 + $0xe0] sm:$0xff] }
  0xf2   : > { %4240 = vmatprep.mubr.msk.bf16.mxu0 %vm462_vm3, %v5308_v35  ;;  %v6132_v35 = vld [vmem:[#allocation13_spill] sm:$0xff]  ;;  %3303 = vperm.xlu0 %4656, %v3153_v49  }
  0xf3   : > { %v2424_v55 = vrot.slane %v6132_v35, 2  ;;  %3298 = vperm.xlu1 %4657, %v3152_v5   ;;  %v6136_v5 = vld [vmem:[#allocation19_spill] sm:$0xff] }
  0xf4   : > { %v2432_v49 = vrot.slane %v6136_v5, 2 }
  0xf5   : > { %v2426_v14 = vor.u32 %v2425_v54, %v2424_v55  ;;  %v3159_v55 = vld [vmem:[%s6065_s3 + $0x110] sm:$0xff] }
  0xf6   : > { %3313 = vperm.xlu0 %4656, %v3155_v53   ;;  %v2434_v54 = vor.u32 %v2433_v1, %v2432_v49  ;;  %v2449_v49 = vshrl.u32 %v6126_v34, 16 }
  0xf7   : > { %4071 = vmatmul.mubr.msk.bf16.gmra.mrb[32].mxu1 %vm462_vm3, %v975_v58  ;;  %3308 = vperm.xlu1 %4657, %v3154_v61   ;;  %v3157_v58 = vld [vmem:[%s6065_s3 + $0x100] sm:$0xff] }
  0xf8   : > { %4076 = vmatprep.mubr.msk.bf16.mxu1 %vm462_vm3, %v5426_v20  ;;  %v3156_v20 = vld [vmem:[%s6065_s3 + $0xf8] sm:$0xff] }
  0xf9   : > { %4241 = vmatmul.mubr.msk.bf16.gmra.mrb[12].mxu0 %vm462_vm3, %v5321_v15  ;;  %v2428_v15 = vrot.slane %v6134_v22, 2  ;;  %v6138_v61 = vld [vmem:[#allocation20_spill] sm:$0xff] }
  0xfa   : > { %4244 = vmatprep.mubr.msk.bf16.mxu0 %vm462_vm3, %v5335_v16  ;;  %v2427_v16 = vsel %vm2380_vm6, %v2422_v24, %v2426_v14  ;;  %3323 = vperm.xlu0 %4656, %v3157_v58   ;;  %v2436_v53 = vrot.slane %v6138_v61, 2  ;;  %v6139_v24 = vld [vmem:[#allocation17_spill] sm:$0xff]  ;;  %v2441_v58 = vrot.slane %v5081_v50, 3 }
  0xfb   : > { %3318 = vperm.xlu1 %4657, %v3156_v20   ;;  %v2437_v20 = vrot.slane %v6139_v24, 3 }
  0xfe   : > { %3333 = vperm.xlu0 %4656, %v3159_v55   ;;  %v2451_v55 = vrot.slane %v2449_v49, 2  ;;  %v1525_v49 = vrot.slane %v6131_v56, 2 }
  0xff   : > { %4077 = vmatmul.mubr.msk.bf16.vlgmr.msra.gmra.mrb[0].mxu1 %vm462_vm3, %v5429_v6  ;;  %v2430_v6 = vor.u32 %v2429_v40, %v2428_v15  ;;  %3328 = vperm.xlu1 %4657, %v3158_v60   ;;  %v6140_v15 = vld [vmem:[#allocation11_spill] sm:$0xff]  ;;  %v2444_v60 = vrot.slane %v1549_v30, 2  ;;  %v2458_v30 = vshrl.u32 %v5509_v52, 16 }
 0x100   : > { %4080 = vmatprep.mubr.msk.bf16.mxu1 %vm462_vm3, %v5447_v8  ;;  %4323 = vmatpush3.bf16.msra.mxu1 %v6124_v23  ;;  %v3160_v23 = vld [vmem:[%s6065_s3 + $0x118] sm:$0xff]  ;;  %v2440_v40 = vrot.slane %v6140_v15, 2 }
 0x101   : > { %4245 = vmatmul.mubr.msk.bf16.gmra.mrb[16].mxu0 %vm462_vm3, %v2423_v26  ;;  %v2431_v8 = vsel %vm2380_vm6, %v2426_v14, %v2430_v6  ;;  %v2435_v26 = vsel %vm2380_vm6, %v2430_v6, %v2434_v54  ;;  %v2438_v14 = vor.u32 %v2437_v20, %v2436_v53  ;;  %v2445_v6 = vrot.slane %v1552_v42, 3 }
 0x102   : > { %4248 = vmatprep.mubr.msk.bf16.mxu0 %vm462_vm3, %v2427_v16  ;;  %v2442_v16 = vor.u32 %v2441_v58, %v2440_v40  ;;  %v2739_v40 = vrot.slane %v4869_v21, 3  ;;  %v2740_v58 = vrot.slane %v4879_v28, 3  ;;  %v2744_v21 = vrot.slane %v4933_v11, 3 }
 0x103   : > { %3338 = vperm.xlu1 %4657, %v3160_v23   ;;  %v2439_v1 = vsel %vm2380_vm6, %v2434_v54, %v2438_v14  ;;  %v2446_v54 = vor.u32 %v2445_v6, %v2444_v60  ;;  %v6141_v60 = vld [vmem:[#allocation6_spill] sm:$0xff] }
 0x105   : > { %v2447_v53 = vsel %vm2380_vm6, %v2442_v16, %v2446_v54 }
 0x107   : > { %4081 = vmatmul.mubr.msk.bf16.gmra.mrb[4].mxu1 %vm462_vm3, %v5450_v37  ;;  %v2452_v37 = vshll.u32 %v6126_v34, 16 }
 0x108   : > { %4084 = vmatprep.mubr.msk.bf16.mxu1 %vm462_vm3, %v5472_v13  ;;  %v2443_v13 = vsel %vm2380_vm6, %v2438_v14, %v2442_v16 }
 0x109   : > { %4249 = vmatmul.mubr.msk.bf16.gmra.mrb[20].mxu0 %vm462_vm3, %v2431_v8  ;;  %v2454_v23 = vrot.slane %v2452_v37, 3  ;;  %v2461_v8 = vshll.u32 %v5509_v52, 16 }
 0x10a   : > { %4252 = vmatprep.mubr.msk.bf16.mxu0 %vm462_vm3, %v2435_v26 }
 0x10b   : > { %v2455_v42 = vor.u32 %v2454_v23, %v2451_v55  ;;  %v2463_v20 = vrot.slane %v2461_v8, 3  ;;  %v1533_v55 = vrot.slane %v6135_v10, 2 }
 0x10d   : > { %v2456_v26 = vsel %vm2380_vm6, %v2446_v54, %v2455_v42  ;;  %v1536_v54 = vrot.slane %v6136_v5, 1 }
 0x10f   : > { %4085 = vmatmul.mubr.msk.bf16.gmra.mrb[8].mxu1 %vm462_vm3, %v5478_v7  ;;  %v2460_v7 = vrot.slane %v2458_v30, 2  ;;  %v1537_v30 = vrot.slane %v6137_v4, 2  ;;  %v2762_v4 = vrot.slane %v5102_v2, 3  ;;  %v1558_v2 = vshrl.u32 %v5357_v47, 16 }
 0x110   : > { %4088 = vmatprep.mubr.msk.bf16.mxu1 %vm462_vm3, %v5501_v46 }
 0x111   : > { %4253 = vmatmul.mubr.msk.bf16.gmra.mrb[24].mxu0 %vm462_vm3, %v2439_v1  ;;  %v2464_v46 = vor.u32 %v2463_v20, %v2460_v7  ;;  %v1528_v1 = vrot.slane %v6132_v35, 1  ;;  %v1544_v20 = vrot.slane %v6140_v15, 1  ;;  %v2768_v15 = vrot.slane %v5065_v29, 3 }
 0x112   : > { %4256 = vmatprep.mubr.msk.bf16.mxu0 %vm462_vm3, %v2443_v13  ;;  %v1532_v13 = vrot.slane %v6134_v22, 1  ;;  %v2760_v22 = vrot.slane %v5063_v19, 3  ;;  %v1538_v19 = vor.u32 %v1537_v30, %v1536_v54  ;;  %v2770_v29 = vrot.slane %v6128_v43, 3 }
 0x113   : > { %v2465_v14 = vsel %vm2380_vm6, %v2455_v42, %v2464_v46  ;;  %v1540_v42 = vrot.slane %v6138_v61, 1  ;;  %v2764_v61 = vrot.slane %v5113_v44, 3  ;;  %v1561_v44 = vshll.u32 %v5357_v47, 16 }
 0x114   : > { %v1534_v35 = vor.u32 %v1533_v55, %v1532_v13 }
 0x117   : > { %4089 = vmatmul.mubr.msk.bf16.gmra.mrb[12].mxu1 %vm462_vm3, %v5507_v59  ;;  %v2741_v59 = vsel %vm2738_vm8, %v2739_v40, %v2740_v58  ;;  %v2763_v40 = vsel %vm2738_vm8, %v2760_v22, %v2762_v4 }
 0x118   : > { %4092 = vmatprep.mubr.msk.bf16.mxu1 %vm462_vm3, %v5532_v17  ;;  %v2742_v17 = vrot.slane %v4899_v38, 3  ;;  %v2748_v38 = vrot.slane %v4943_v18, 3  ;;  %v2752_v18 = vrot.slane %v5000_v63, 3 }
 0x119   : > { %4257 = vmatmul.mubr.msk.bf16.gmra.mrb[28].mxu0 %vm462_vm3, %v2447_v53  ;;  %v1541_v53 = vrot.slane %v6139_v24, 2  ;;  %v1539_v24 = vsel %vm1480_vm4, %v1534_v35, %v1538_v19 }
 0x11a   : > { %4260 = vmatprep.mubr.msk.bf16.mxu0 %vm462_vm3, %v2456_v26  ;;  %v2743_v28 = vsel %vm2738_vm8, %v2740_v58, %v2742_v17  ;;  %v1545_v26 = vrot.slane %v5081_v50, 2  ;;  %v2765_v58 = vsel %vm2738_vm8, %v2762_v4, %v2764_v61  ;;  %v2766_v50 = vrot.slane %v5149_v39, 3 }
 0x11b   : > { %v1542_v5 = vor.u32 %v1541_v53, %v1540_v42  ;;  %v2772_v39 = vrot.slane %v6126_v34, 3  ;;  %v4658_v34 = vld [vmem:[%s6066_s4] sm:$0xff]  }
 0x11d   : > { %v1543_v46 = vsel %vm1480_vm4, %v1538_v19, %v1542_v5 }
 0x11f   : > { %4093 = vmatmul.mubr.msk.bf16.gmra.mrb[16].mxu1 %vm462_vm3, %v5538_v25  ;;  %v2745_v25 = vsel %vm2738_vm8, %v2742_v17, %v2744_v21  ;;  %v1560_v17 = vrot.slane %v1558_v2, 1 }
 0x120   : > { %4096 = vmatprep.mubr.msk.bf16.mxu1 %vm462_vm3, %v5570_v33  ;;  %v2746_v33 = vrot.slane %v4935_v12, 3  ;;  %v2750_v12 = vrot.slane %v4965_v27, 3  ;;  %v1254_v27 = vrot.slane %v5357_v47, 1  ;;  %v2769_v47 = vsel %vm2738_vm8, %v2766_v50, %v2768_v15 }
 0x121   : > { %4261 = vmatmul.mubr.msk.bf16.gmra.mrb[32].mxu0 %vm462_vm3, %v2465_v14  ;;  %v1546_v14 = vor.u32 %v1545_v26, %v1544_v20 }
 0x122   : > { %4266 = vmatprep.mubr.msk.bf16.mxu0 %vm462_vm3, %v2741_v59  ;;  %v2747_v11 = vsel %vm2738_vm8, %v2744_v21, %v2746_v33  ;;  %v2751_v37 = vsel %vm2738_vm8, %v2748_v38, %v2750_v12  ;;  %v1563_v21 = vrot.slane %v1561_v44, 2 }
 0x123   : > { %v1547_v59 = vsel %vm1480_vm4, %v1542_v5, %v1546_v14 }
 0x127   : > { %4097 = vmatmul.mubr.msk.bf16.gmra.mrb[20].mxu1 %vm462_vm3, %v5576_v51  ;;  %v2749_v51 = vsel %vm2738_vm8, %v2746_v33, %v2748_v38  ;;  %v1564_v33 = vor.u32 %v1563_v21, %v1560_v17 }
 0x128   : > { %4100 = vmatprep.mubr.msk.bf16.mxu1 %vm462_vm3, %v5596_v48  ;;  %v1252_v48 = vrot.slane %v6128_v43, 1  ;;  %v4732_v43 = vmov 0.0  }
 0x129   : > { %4267 = vmatmul.mubr.msk.bf16.vlgmr.msra.gmra.mrb[0].mxu0 %vm462_vm3, %v2743_v28  ;;  %v1556_v28 = vsel %vm1480_vm4, %v1546_v14, %v5567_v45  ;;  %v1565_v38 = vsel %vm1480_vm4, %v5567_v45, %v1564_v33  ;;  %4302 = vmatprep.subr.bf16.mxu1 %v4732_v43  ;;  %v4659_v45 = vld [vmem:[%s6066_s4 + $0x8] sm:$0xff]  }
 0x12a   : > { %4270 = vmatprep.mubr.msk.bf16.mxu0 %vm462_vm3, %v2745_v25  ;;  %v1253_v16 = vsel %vm938_vm7, %v5615_v32, %v1252_v48  ;;  %v2754_v32 = vrot.slane %v5002_v0, 3  ;;  %v1255_v56 = vsel %vm938_vm7, %v1252_v48, %v1254_v27  ;;  %v2767_v25 = vsel %vm2738_vm8, %v2764_v61, %v2766_v50 }
 0x12b   : > { %v2774_v48 = vrot.slane %v5509_v52, 3  ;;  %v4660_v52 = vld [vmem:[%s6066_s4 + $0x10] sm:$0xff]  }
 0x12c   : > { %v2755_v23 = vsel %vm2738_vm8, %v2752_v18, %v2754_v32 }
 0x12f   : > { %4101 = vmatmul.mubr.msk.bf16.gmra.mrb[24].mxu1 %vm462_vm3, %v5602_v57  ;;  %v1524_v57 = vrot.slane %v6130_v36, 1  ;;  %v2756_v36 = vrot.slane %v5023_v31, 3 }
 0x130   : > { %4104 = vmatprep.mubr.msk.bf16.mxu1 %vm462_vm3, %v5626_v62  ;;  %v2753_v62 = vsel %vm2738_vm8, %v2750_v12, %v2752_v18  ;;  %v2775_v12 = vsel %vm2738_vm8, %v2772_v39, %v2774_v48  ;;  %v4661_v18 = vld [vmem:[%s6066_s4 + $0x18] sm:$0xff]  }
 0x131   : > { %4271 = vmatmul.mubr.msk.bf16.gmra.mrb[4].mxu0 %vm462_vm3, %v2747_v11  ;;  %v1526_v63 = vor.u32 %v1525_v49, %v1524_v57  ;;  %v2757_v0 = vsel %vm2738_vm8, %v2754_v32, %v2756_v36  ;;  %v2771_v11 = vsel %vm2738_vm8, %v2768_v15, %v2770_v29  ;;  %v4663_v57 = vld [vmem:[%s6066_s4 + $0x28] sm:$0xff]   ;;  %v4665_v32 = vld [vmem:[%s6066_s4 + $0x38] sm:$0xff]  }
 0x132   : > { %4274 = vmatprep.mubr.msk.bf16.mxu0 %vm462_vm3, %v2749_v51  ;;  %v2773_v51 = vsel %vm2738_vm8, %v2770_v29, %v2772_v39 }
 0x133   : > { %v1527_v6 = vsel %vm1480_vm4, %v6141_v60, %v1526_v63 }
 0x137   : > { %4105 = vmatmul.mubr.msk.bf16.gmra.mrb[28].mxu1 %vm462_vm3, %v5633_v9  ;;  %v1529_v9 = vrot.slane %v6133_v41, 2  ;;  %v2758_v41 = vrot.slane %v5056_v3, 3 }
 0x138   : > { %4108 = vmatprep.mubr.msk.bf16.mxu1 %vm462_vm3, %v1253_v16  ;;  %v4662_v16 = vld [vmem:[%s6066_s4 + $0x20] sm:$0xff]  }
 0x139   : > { %4275 = vmatmul.mubr.msk.bf16.gmra.mrb[8].mxu0 %vm462_vm3, %v2751_v37  ;;  %v1530_v31 = vor.u32 %v1529_v9, %v1528_v1  ;;  %v2759_v7 = vsel %vm2738_vm8, %v2756_v36, %v2758_v41  ;;  %v2761_v3 = vsel %vm2738_vm8, %v2758_v41, %v2760_v22  ;;  %v4664_v37 = vld [vmem:[%s6066_s4 + $0x30] sm:$0xff]   ;;  %v3164_v36 = vpop.permute.xlu0 %3163 }
 0x13a   : > { %4278 = vmatprep.mubr.msk.bf16.mxu0 %vm462_vm3, %v2753_v62 }
 0x13b   : > { %v1531_v10 = vsel %vm1480_vm4, %v1526_v63, %v1530_v31  ;;  %v1535_v8 = vsel %vm1480_vm4, %v1530_v31, %v1534_v35 }
 0x13d   : > { %v3169_v13 = vpop.permute.xlu0 %3168 }
 0x13f   : > { %4109 = vmatmul.mubr.msk.bf16.gmra.mrb[32].mxu1 %vm462_vm3, %v1255_v56 }
 0x140   : > { %4134 = vmatprep.mubr.msk.bf16.mxu1 %vm462_vm3, %v1527_v6  ;;  %v3174_v6 = vpop.permute.xlu1 %3173 }
 0x141   : > { %4279 = vmatmul.mubr.msk.bf16.gmra.mrb[12].mxu0 %vm462_vm3, %v2755_v23  ;;  %v3184_v35 = vpop.permute.xlu0 %3183 }
 0x142   : > { %4282 = vmatprep.mubr.msk.bf16.mxu0 %vm462_vm3, %v2757_v0 }
 0x144   : > { %v3179_v0 = vpop.permute.xlu1 %3178 }
 0x145   : > { %v5890_v54 = vpop.permute.xlu0 %3193 }
 0x147   : > { %4135 = vmatmul.mubr.msk.bf16.vlgmr.msra.gmra.mrb[20].mxu1 %vm462_vm3, %v1531_v10 }
 0x148   : > { %4138 = vmatprep.mubr.msk.bf16.mxu1 %vm462_vm3, %v1535_v8  ;;  %4303 = vmatpush3.bf16.msra.mxu1 %v4658_v34  ;;  %v5886_v22 = vpop.permute.xlu1 %3188 }
 0x149   : > { %4283 = vmatmul.mubr.msk.bf16.gmra.mrb[16].mxu0 %vm462_vm3, %v2759_v7  ;;  %4304 = vmatprep.subr.bf16.mxu1 %v4732_v43  ;;  %v5900_v7 = vpop.permute.xlu0 %3203 }
 0x14a   : > { %4286 = vmatprep.mubr.msk.bf16.mxu0 %vm462_vm3, %v2761_v3 }
 0x14c   : > { %4305 = vmatpush3.bf16.msra.mxu1 %v4659_v45  ;;  %v5898_v53 = vpop.permute.xlu1 %3198 }
 0x14d   : > { %4306 = vmatprep.subr.bf16.mxu1 %v4732_v43 }
 0x14f   : > { %4139 = vmatmul.mubr.msk.bf16.gmra.mrb[24].mxu1 %vm462_vm3, %v1539_v24  ;;  %v5912_v24 = vpop.permute.xlu0 %3213 }
 0x150   : > { %4142 = vmatprep.mubr.msk.bf16.mxu1 %vm462_vm3, %v1543_v46  ;;  %4307 = vmatpush3.bf16.msra.mxu1 %v4660_v52  ;;  %v5910_v61 = vpop.permute.xlu1 %3208 }
 0x151   : > { %4287 = vmatmul.mubr.msk.bf16.gmra.mrb[20].mxu0 %vm462_vm3, %v2763_v40  ;;  %4308 = vmatprep.subr.bf16.mxu1 %v4732_v43 }
 0x152   : > { %4290 = vmatprep.mubr.msk.bf16.mxu0 %vm462_vm3, %v2765_v58  ;;  %v5921_v58 = vld [vmem:[%s6064_s2] ss:$0 sm:$0xff] }
 0x153   : > { %v5916_v46 = vpop.permute.xlu0 %3223 }
 0x154   : > { %4309 = vmatpush3.bf16.msra.mxu1 %v4661_v18  ;;  %v5914_v20 = vpop.permute.xlu1 %3218 }
 0x155   : > { %4310 = vmatprep.subr.bf16.mxu1 %v4732_v43 }
 0x157   : > { %4143 = vmatmul.mubr.msk.bf16.gmra.mrb[28].mxu1 %vm462_vm3, %v1547_v59  ;;  %v5929_v29 = vpop.permute.xlu0 %3233 }
 0x158   : > { %4146 = vmatprep.mubr.msk.bf16.mxu1 %vm462_vm3, %v1556_v28  ;;  %4311 = vmatpush3.bf16.msra.mxu1 %v4662_v16  ;;  %v5925_v28 = vpop.permute.xlu1 %3228 }
 0x159   : > { %4291 = vmatmul.mubr.msk.bf16.gmra.mrb[24].mxu0 %vm462_vm3, %v2767_v25  ;;  %4312 = vmatprep.subr.bf16.mxu1 %v4732_v43 }
 0x15a   : > { %4294 = vmatprep.mubr.msk.bf16.mxu0 %vm462_vm3, %v2769_v47 }
 0x15c   : > { %4313 = vmatpush3.bf16.msra.mxu1 %v4663_v57 }
 0x15d   : > { %4314 = vmatprep.subr.bf16.mxu1 %v4732_v43 }
 0x15f   : > { %4147 = vmatmul.mubr.msk.bf16.gmra.mrb[32].mxu1 %vm462_vm3, %v1565_v38 }
 0x160   : > { %4318 = vmatprep.mubr.msk.bf16.mxu1 %vm4733_vm9, %v4732_v43  ;;  %4315 = vmatpush3.bf16.msra.mxu1 %v4664_v37 }
 0x161   : > { %4295 = vmatmul.mubr.msk.bf16.gmra.mrb[28].mxu0 %vm462_vm3, %v2771_v11  ;;  %4316 = vmatprep.subr.bf16.mxu1 %v4732_v43 }
 0x162   : > { %4298 = vmatprep.mubr.msk.bf16.mxu0 %vm462_vm3, %v2773_v51 }
 0x164   : > { %4317 = vmatpush3.bf16.msra.mxu1 %v4665_v32  ;;  %v5935_v32 = vpop.permute.xlu0 %3243 }
 0x169   : > { %4299 = vmatmul.mubr.msk.bf16.gmra.mrb[32].mxu0 %vm462_vm3, %v2775_v12 }
 0x1d2   : > { %v4078_v49 = vpop.f32.mrb[0].mxu1 }
 0x1d3   : > { %v1299_v62 = vpop.f32.mrb[1].mxu1 }
 0x1d4   : > { %v4079_v27 = vpop.f32.mrb[2].mxu1 }
 0x1d5   : > { %v1302_v63 = vpop.f32.mrb[3].mxu1 }
 0x1da   : > { %v4082_v56 = vpop.f32.mrb[4].mxu1 }
 0x1db   : > { %v1315_v1 = vpop.f32.mrb[5].mxu1 }
 0x1dc   : > { %v4083_v9 = vpop.f32.mrb[6].mxu1 }
 0x1dd   : > { %v1318_v60 = vpop.f32.mrb[7].mxu1 }
 0x1e2   : > { %v5878_v55 = vpop.f32.mrb[8].mxu1 }
 0x1e3   : > { %v5880_v23 = vpop.f32.mrb[9].mxu1 }
 0x1e4   : > { %v5882_v31 = vpop.f32.mrb[10].mxu1 }
 0x1e5   : > { %v5884_v41 = vpop.f32.mrb[11].mxu1 }
 0x1ea   : > { %v5888_v10 = vpop.f32.mrb[12].mxu1 }
 0x1eb   : > { %v5892_v30 = vpop.f32.mrb[13].mxu1 }
 0x1ec   : > { %v5894_v8 = vpop.f32.mrb[14].mxu1 }
 0x1ed   : > { %v5896_v42 = vpop.f32.mrb[15].mxu1 }
 0x1f2   : > { %v5902_v3 = vpop.f32.mrb[16].mxu1 }
 0x1f3   : > { %v5904_v19 = vpop.f32.mrb[17].mxu1 }
 0x1f4   : > { %v5906_v5 = vpop.f32.mrb[18].mxu1 }
 0x1f5   : > { %v5908_v4 = vpop.f32.mrb[19].mxu1 }
 0x1fc   : > { %v4268_v26 = vpop.f32.mrb[0].mxu0 }
 0x1fd   : > { %v4324_v40 = vadd.f32 %v4268_v26, %v4078_v49  ;;  %v2867_v14 = vpop.f32.mrb[1].mxu0  ;;  %v5932_v49 = vpop.permute.xlu1 %3238 }
 0x1fe   : > { %v4325_v2 = vadd.f32 %v2867_v14, %v1299_v62  ;;  %v4269_v44 = vpop.f32.mrb[2].mxu0 }
 0x1ff   : > { %v4326_v50 = vadd.f32 %v4269_v44, %v4079_v27  ;;  %v2870_v15 = vpop.f32.mrb[3].mxu0  ;;  %v3055_v59 = vadd.f32 %v4324_v40, %v5921_v58 }
 0x200   : > { %v3053_v17 = vadd.f32 %v4325_v2, %v5921_v58  ;;  %v4327_v21 = vadd.f32 %v2870_v15, %v1302_v63 }
 0x201   : > { %v3056_v47 = vadd.f32 %v4326_v50, %v5921_v58  ;;  %v3091_v39 = vmax.f32 %v3055_v59, 0.0  ;;  %v5940_v59 = vpop.permute.xlu1 %3248 }
 0x202   : > { %v3089_v25 = vmax.f32 %v3053_v17, 0.0  ;;  %v3054_v33 = vadd.f32 %v4327_v21, %v5921_v58 }
 0x203   : > { %v3092_v34 = vmax.f32 %v3056_v47, 0.0  ;;  %v3343_v37 = vmul.f32 %v3174_v6, %v3091_v39 }
 0x204   : > { %v3090_v38 = vmax.f32 %v3054_v33, 0.0  ;;  %v4272_v11 = vpop.f32.mrb[4].mxu0  ;;  %v3341_v12 = vmul.f32 %v3164_v36, %v3089_v25  ;;  %v5944_v25 = vpop.permute.xlu0 %3253 }
 0x205   : > { %v4328_v51 = vadd.f32 %v4272_v11, %v4082_v56  ;;  %v2883_v48 = vpop.f32.mrb[5].mxu0  ;;  %v3344_v36 = vmul.f32 %v3179_v0, %v3092_v34  ;;  %v5954_v34 = vpop.permute.xlu1 %3258 }
 0x206   : > { %v3342_v43 = vmul.f32 %v3169_v13, %v3090_v38  ;;  %v4329_v45 = vadd.f32 %v2883_v48, %v1315_v1  ;;  %v4273_v52 = vpop.f32.mrb[6].mxu0 }
 0x207   : > { %v3059_v18 = vadd.f32 %v4328_v51, %v5921_v58  ;;  %v4330_v16 = vadd.f32 %v4273_v52, %v4083_v9  ;;  %v2886_v57 = vpop.f32.mrb[7].mxu0 }
 0x208   : > { %v3377_v62 = vadd.f32 %v3342_v43, %v3341_v12  ;;  %v3057_v27 = vadd.f32 %v4329_v45, %v5921_v58  ;;  %v4331_v63 = vadd.f32 %v2886_v57, %v1318_v60 }
 0x209   : > { %v3060_v56 = vadd.f32 %v4330_v16, %v5921_v58  ;;  %v3095_v40 = vmax.f32 %v3059_v18, 0.0  ;;  %v5957_v18 = vpop.permute.xlu0 %3263 }
 0x20a   : > { %v3378_v26 = vadd.f32 %v3377_v62, %v3343_v37  ;;  %v3093_v13 = vmax.f32 %v3057_v27, 0.0  ;;  %v3058_v1 = vadd.f32 %v4331_v63, %v5921_v58 }
 0x20b   : > { %v3096_v50 = vmax.f32 %v3060_v56, 0.0  ;;  %v3347_v47 = vmul.f32 %v5890_v54, %v3095_v40  ;;  %v5968_v40 = vpop.permute.xlu1 %3268 }
 0x20c   : > { %v3345_v14 = vmul.f32 %v3184_v35, %v3093_v13  ;;  %v3379_v9 = vadd.f32 %v3378_v26, %v3344_v36  ;;  %v3094_v2 = vmax.f32 %v3058_v1, 0.0  ;;  %v4276_v44 = vpop.f32.mrb[8].mxu0 }
 0x20d   : > { %v4332_v6 = vadd.f32 %v4276_v44, %v5878_v55  ;;  %v2899_v15 = vpop.f32.mrb[9].mxu0  ;;  %v3348_v51 = vmul.f32 %v5898_v53, %v3096_v50 }
 0x20e   : > { %v3380_v60 = vadd.f32 %v3379_v9, %v3345_v14  ;;  %v3346_v17 = vmul.f32 %v5886_v22, %v3094_v2  ;;  %v4333_v0 = vadd.f32 %v2899_v15, %v5880_v23  ;;  %v4277_v21 = vpop.f32.mrb[10].mxu0 }
 0x20f   : > { %v4334_v35 = vadd.f32 %v4277_v21, %v5882_v31  ;;  %v2902_v33 = vpop.f32.mrb[11].mxu0  ;;  %v3063_v38 = vadd.f32 %v4332_v6, %v5921_v58 }
 0x210   : > { %v3381_v39 = vadd.f32 %v3380_v60, %v3346_v17  ;;  %v3061_v55 = vadd.f32 %v4333_v0, %v5921_v58  ;;  %v4335_v11 = vadd.f32 %v2902_v33, %v5884_v41 }
 0x211   : > { %v3064_v23 = vadd.f32 %v4334_v35, %v5921_v58  ;;  %v3099_v54 = vmax.f32 %v3063_v38, 0.0 }
 0x212   : > { %v3382_v22 = vadd.f32 %v3381_v39, %v3347_v47  ;;  %v3097_v48 = vmax.f32 %v3061_v55, 0.0  ;;  %v3062_v12 = vadd.f32 %v4335_v11, %v5921_v58 }
 0x213   : > { %v3100_v57 = vmax.f32 %v3064_v23, 0.0  ;;  %v3351_v36 = vmul.f32 %v5912_v24, %v3099_v54  ;;  %v3279_v23 = vpop.permute.xlu1 %3278 }
 0x214   : > { %v3349_v31 = vmul.f32 %v5900_v7, %v3097_v48  ;;  %v3383_v43 = vadd.f32 %v3382_v22, %v3348_v51  ;;  %v3098_v45 = vmax.f32 %v3062_v12, 0.0  ;;  %v4280_v52 = vpop.f32.mrb[12].mxu0 }
 0x215   : > { %v4336_v41 = vadd.f32 %v4280_v52, %v5888_v10  ;;  %v2915_v16 = vpop.f32.mrb[13].mxu0 }
 0x216   : > { %v3384_v53 = vadd.f32 %v3383_v43, %v3349_v31  ;;  %v3350_v37 = vmul.f32 %v5910_v61, %v3098_v45  ;;  %v4337_v62 = vadd.f32 %v2915_v16, %v5892_v30  ;;  %v4281_v27 = vpop.f32.mrb[14].mxu0  ;;  %v3352_v61 = vmul.f32 %v5914_v20, %v3100_v57 }
 0x217   : > { %v3067_v63 = vadd.f32 %v4336_v41, %v5921_v58  ;;  %v4338_v56 = vadd.f32 %v4281_v27, %v5894_v8  ;;  %v2918_v7 = vpop.f32.mrb[15].mxu0  ;;  %v5972_v8 = vpop.permute.xlu0 %3273 }
 0x218   : > { %v3385_v26 = vadd.f32 %v3384_v53, %v3350_v37  ;;  %v3065_v13 = vadd.f32 %v4337_v62, %v5921_v58  ;;  %v4339_v10 = vadd.f32 %v2918_v7, %v5896_v42 }
 0x219   : > { %v3068_v1 = vadd.f32 %v4338_v56, %v5921_v58  ;;  %v3103_v44 = vmax.f32 %v3067_v63, 0.0 }
 0x21a   : > { %v3386_v30 = vadd.f32 %v3385_v26, %v3351_v36  ;;  %v3101_v14 = vmax.f32 %v3065_v13, 0.0  ;;  %v3066_v9 = vadd.f32 %v4339_v10, %v5921_v58  ;;  %v4136_v2 = vpop.f32.mrb[20].mxu1 }
 0x21b   : > { %v1737_v24 = vpop.f32.mrb[21].mxu1  ;;  %v3104_v17 = vmax.f32 %v3068_v1, 0.0  ;;  %v3355_v38 = vmul.f32 %v5929_v29, %v3103_v44  ;;  %v5986_v31 = vpop.permute.xlu0 %3283 }
 0x21c   : > { %v3353_v50 = vmul.f32 %v5916_v46, %v3101_v14  ;;  %v3387_v6 = vadd.f32 %v3386_v30, %v3352_v61  ;;  %v3102_v15 = vmax.f32 %v3066_v9, 0.0  ;;  %v4284_v42 = vpop.f32.mrb[16].mxu0  ;;  %v4137_v60 = vpop.f32.mrb[22].mxu1 }
 0x21d   : > { %v4340_v0 = vadd.f32 %v4284_v42, %v5902_v3  ;;  %v2931_v21 = vpop.f32.mrb[17].mxu0  ;;  %v1740_v20 = vpop.f32.mrb[23].mxu1  ;;  %v3356_v48 = vmul.f32 %v5932_v49, %v3104_v17 }
 0x21e   : > { %v3388_v47 = vadd.f32 %v3387_v6, %v3353_v50  ;;  %v3354_v35 = vmul.f32 %v5925_v28, %v3102_v15  ;;  %v4341_v33 = vadd.f32 %v2931_v21, %v5904_v19  ;;  %v4285_v39 = vpop.f32.mrb[18].mxu0  ;;  %v3289_v30 = vpop.permute.xlu1 %3288 }
 0x21f   : > { %v4342_v55 = vadd.f32 %v4285_v39, %v5906_v5  ;;  %v2934_v46 = vpop.f32.mrb[19].mxu0  ;;  %v3071_v51 = vadd.f32 %v4340_v0, %v5921_v58 }
 0x220   : > { %v3389_v11 = vadd.f32 %v3388_v47, %v3354_v35  ;;  %v3069_v22 = vadd.f32 %v4341_v33, %v5921_v58  ;;  %v4343_v3 = vadd.f32 %v2934_v46, %v5908_v4 }
 0x221   : > { %v3072_v19 = vadd.f32 %v4342_v55, %v5921_v58  ;;  %v3107_v43 = vmax.f32 %v3071_v51, 0.0 }
 0x222   : > { %v3390_v12 = vadd.f32 %v3389_v11, %v3355_v38  ;;  %v3105_v28 = vmax.f32 %v3069_v22, 0.0  ;;  %v3070_v54 = vadd.f32 %v4343_v3, %v5921_v58  ;;  %v4140_v29 = vpop.f32.mrb[24].mxu1  ;;  %v3299_v3 = vpop.permute.xlu1 %3298 }
 0x223   : > { %v1753_v5 = vpop.f32.mrb[25].mxu1  ;;  %v3108_v62 = vmax.f32 %v3072_v19, 0.0  ;;  %v3359_v13 = vmul.f32 %v5944_v25, %v3107_v43 }
 0x224   : > { %v3357_v45 = vmul.f32 %v5935_v32, %v3105_v28  ;;  %v3391_v52 = vadd.f32 %v3390_v12, %v3356_v48  ;;  %v3106_v41 = vmax.f32 %v3070_v54, 0.0  ;;  %v4288_v16 = vpop.f32.mrb[20].mxu0  ;;  %v4141_v4 = vpop.f32.mrb[26].mxu1 }
 0x225   : > { %v4344_v53 = vadd.f32 %v4288_v16, %v4136_v2  ;;  %v2947_v49 = vpop.f32.mrb[21].mxu0  ;;  %v1756_v57 = vpop.f32.mrb[27].mxu1  ;;  %v3360_v14 = vmul.f32 %v5954_v34, %v3108_v62 }
 0x226   : > { %v3392_v37 = vadd.f32 %v3391_v52, %v3357_v45  ;;  %v3358_v27 = vmul.f32 %v5940_v59, %v3106_v41  ;;  %v4345_v63 = vadd.f32 %v2947_v49, %v1737_v24  ;;  %v4289_v56 = vpop.f32.mrb[22].mxu0  ;;  %v3294_v24 = vpop.permute.xlu0 %3293 }
 0x227   : > { %v3075_v7 = vadd.f32 %v4344_v53, %v5921_v58  ;;  %v4346_v36 = vadd.f32 %v4289_v56, %v4137_v60  ;;  %v2950_v26 = vpop.f32.mrb[23].mxu0 }
 0x228   : > { %v3393_v32 = vadd.f32 %v3392_v37, %v3358_v27  ;;  %v3073_v10 = vadd.f32 %v4345_v63, %v5921_v58  ;;  %v4347_v1 = vadd.f32 %v2950_v26, %v1740_v20  ;;  %v3309_v63 = vpop.permute.xlu1 %3308 }
 0x229   : > { %v3076_v61 = vadd.f32 %v4346_v36, %v5921_v58  ;;  %v3111_v50 = vmax.f32 %v3075_v7, 0.0 }
 0x22a   : > { %v3394_v9 = vadd.f32 %v3393_v32, %v3359_v13  ;;  %v3109_v2 = vmax.f32 %v3073_v10, 0.0  ;;  %v3074_v59 = vadd.f32 %v4347_v1, %v5921_v58  ;;  %v4144_v44 = vpop.f32.mrb[28].mxu1 }
 0x22b   : > { %v1769_v6 = vpop.f32.mrb[29].mxu1  ;;  %v3112_v0 = vmax.f32 %v3076_v61, 0.0  ;;  %v3363_v38 = vmul.f32 %v5972_v8, %v3111_v50 }
 0x22c   : > { %v3361_v15 = vmul.f32 %v5957_v18, %v3109_v2  ;;  %v3395_v25 = vadd.f32 %v3394_v9, %v3360_v14  ;;  %v3110_v42 = vmax.f32 %v3074_v59, 0.0  ;;  %v4292_v60 = vpop.f32.mrb[24].mxu0  ;;  %v4145_v17 = vpop.f32.mrb[30].mxu1 }
 0x22d   : > { %v4348_v21 = vadd.f32 %v4292_v60, %v4140_v29  ;;  %v2963_v20 = vpop.f32.mrb[25].mxu0  ;;  %v1772_v47 = vpop.f32.mrb[31].mxu1  ;;  %v3364_v48 = vmul.f32 %v3279_v23, %v3112_v0 }
 0x22e   : > { %v3396_v35 = vadd.f32 %v3395_v25, %v3361_v15  ;;  %v3362_v34 = vmul.f32 %v5968_v40, %v3110_v42  ;;  %v4349_v33 = vadd.f32 %v2963_v20, %v1753_v5  ;;  %v4293_v39 = vpop.f32.mrb[26].mxu0  ;;  %v3304_v29 = vpop.permute.xlu0 %3303 }
 0x22f   : > { %v4350_v55 = vadd.f32 %v4293_v39, %v4141_v4  ;;  %v2966_v46 = vpop.f32.mrb[27].mxu0  ;;  %v3079_v18 = vadd.f32 %v4348_v21, %v5921_v58  ;;  %v3319_v15 = vpop.permute.xlu1 %3318 }
 0x230   : > { %v3397_v11 = vadd.f32 %v3396_v35, %v3362_v34  ;;  %v3077_v51 = vadd.f32 %v4349_v33, %v5921_v58  ;;  %v4351_v22 = vadd.f32 %v2966_v46, %v1756_v57 }
 0x231   : > { %v3080_v19 = vadd.f32 %v4350_v55, %v5921_v58  ;;  %v3115_v8 = vmax.f32 %v3079_v18, 0.0 }
 0x232   : > { %v3398_v12 = vadd.f32 %v3397_v11, %v3363_v38  ;;  %v3113_v28 = vmax.f32 %v3077_v51, 0.0  ;;  %v3078_v40 = vadd.f32 %v4351_v22, %v5921_v58  ;;  %v4148_v54 = vpop.f32.mrb[32].mxu1 }
 0x233   : > { %v1785_v5 = vpop.f32.mrb[33].mxu1  ;;  %v3116_v57 = vmax.f32 %v3080_v19, 0.0  ;;  %v3367_v26 = vmul.f32 %v3294_v24, %v3115_v8 }
 0x234   : > { %v3365_v43 = vmul.f32 %v5986_v31, %v3113_v28  ;;  %v3399_v45 = vadd.f32 %v3398_v12, %v3364_v48  ;;  %v3114_v52 = vmax.f32 %v3078_v40, 0.0  ;;  %v4296_v41 = vpop.f32.mrb[28].mxu0  ;;  %v4149_v16 = vpop.f32.mrb[34].mxu1 }
 0x235   : > { %v4352_v4 = vadd.f32 %v4296_v41, %v4144_v44  ;;  %v2979_v53 = vpop.f32.mrb[29].mxu0  ;;  %v1788_v49 = vpop.f32.mrb[35].mxu1  ;;  %v3368_v1 = vmul.f32 %v3299_v3, %v3116_v57 }
 0x236   : > { %v3400_v23 = vadd.f32 %v3399_v45, %v3365_v43  ;;  %v3366_v37 = vmul.f32 %v3289_v30, %v3114_v52  ;;  %v4353_v62 = vadd.f32 %v2979_v53, %v1769_v6  ;;  %v4297_v27 = vpop.f32.mrb[30].mxu0  ;;  %v3314_v30 = vpop.permute.xlu0 %3313 }
 0x237   : > { %v3083_v56 = vadd.f32 %v4352_v4, %v5921_v58  ;;  %v4354_v7 = vadd.f32 %v4297_v27, %v4145_v17  ;;  %v2982_v36 = vpop.f32.mrb[31].mxu0  ;;  %v3329_v3 = vpop.permute.xlu1 %3328 }
 0x238   : > { %v3401_v13 = vadd.f32 %v3400_v23, %v3366_v37  ;;  %v3081_v31 = vadd.f32 %v4353_v62, %v5921_v58  ;;  %v4355_v32 = vadd.f32 %v2982_v36, %v1772_v47  ;;  %v3435_v62 = vld [vmem:[%s6067_s5] sm:$0x1] }
 0x239   : > { %v3084_v10 = vadd.f32 %v4354_v7, %v5921_v58  ;;  %v3119_v2 = vmax.f32 %v3083_v56, 0.0 }
 0x23a   : > { %v3402_v61 = vadd.f32 %v3401_v13, %v3367_v26  ;;  %v3117_v14 = vmax.f32 %v3081_v31, 0.0  ;;  %v3082_v9 = vadd.f32 %v4355_v32, %v5921_v58  ;;  %v3324_v55 = vpop.permute.xlu0 %3323 }
 0x23b   : > { %v3120_v25 = vmax.f32 %v3084_v10, 0.0  ;;  %v3371_v20 = vmul.f32 %v3314_v30, %v3119_v2  ;;  %v3339_v45 = vpop.permute.xlu1 %3338 }
 0x23c   : > { %v3369_v59 = vmul.f32 %v3304_v29, %v3117_v14  ;;  %v3403_v44 = vadd.f32 %v3402_v61, %v3368_v1  ;;  %v3118_v50 = vmax.f32 %v3082_v9, 0.0  ;;  %v4300_v6 = vpop.f32.mrb[32].mxu0 }
 0x23d   : > { %v4356_v24 = vadd.f32 %v4300_v6, %v4148_v54  ;;  %v2995_v42 = vpop.f32.mrb[33].mxu0  ;;  %v3372_v46 = vmul.f32 %v3319_v15, %v3120_v25 }
 0x23e   : > { %v3404_v60 = vadd.f32 %v3403_v44, %v3369_v59  ;;  %v3370_v17 = vmul.f32 %v3309_v63, %v3118_v50  ;;  %v4357_v0 = vadd.f32 %v2995_v42, %v1785_v5  ;;  %v4301_v21 = vpop.f32.mrb[34].mxu0  ;;  %v3334_v5 = vpop.permute.xlu0 %3333 }
 0x23f   : > { %v4358_v47 = vadd.f32 %v4301_v21, %v4149_v16  ;;  %v2998_v35 = vpop.f32.mrb[35].mxu0  ;;  %v3087_v33 = vadd.f32 %v4356_v24, %v5921_v58 }
 0x240   : > { %v3405_v34 = vadd.f32 %v3404_v60, %v3370_v17  ;;  %v3085_v39 = vadd.f32 %v4357_v0, %v5921_v58  ;;  %v4359_v38 = vadd.f32 %v2998_v35, %v1788_v49 }
 0x241   : > { %v3088_v51 = vadd.f32 %v4358_v47, %v5921_v58  ;;  %v3123_v48 = vmax.f32 %v3087_v33, 0.0 }
 0x242   : > { %v3406_v11 = vadd.f32 %v3405_v34, %v3371_v20  ;;  %v3121_v18 = vmax.f32 %v3085_v39, 0.0  ;;  %v3086_v22 = vadd.f32 %v4359_v38, %v5921_v58 }
 0x243   : > { %v3124_v54 = vmax.f32 %v3088_v51, 0.0  ;;  %v3375_v8 = vmul.f32 %v3334_v5, %v3123_v48 }
 0x244   : > { %v3373_v12 = vmul.f32 %v3324_v55, %v3121_v18  ;;  %v3407_v28 = vadd.f32 %v3406_v11, %v3372_v46  ;;  %v3122_v19 = vmax.f32 %v3086_v22, 0.0 }
 0x245   : > { %v3376_v52 = vmul.f32 %v3339_v45, %v3124_v54 }
 0x246   : > { %v3408_v40 = vadd.f32 %v3407_v28, %v3373_v12  ;;  %v3374_v29 = vmul.f32 %v3329_v3, %v3122_v19 }
 0x248   : > { %v3409_v43 = vadd.f32 %v3408_v40, %v3374_v29 }
 0x24a   : > { %v3410_v41 = vadd.f32 %v3409_v43, %v3375_v8 }
 0x24c   : > { %v3411_v16 = vadd.f32 %v3410_v41, %v3376_v52 }
 0x24e   : > { %v3412_v4 = vrot.slane %v3411_v16, 4 }
 0x250   : > { %v3413_v53 = vadd.f32 %v3412_v4, %v3411_v16 }
 0x252   : > { %v3414_v58 = vrot.slane %v3413_v53, 2 }
 0x254   : > { %v3415_v49 = vadd.f32 %v3414_v58, %v3413_v53 }
 0x256   : > { %v3416_v23 = vrot.slane %v3415_v49, 1 }
 0x258   : > { %v3417_v57 = vadd.f32 %v3416_v23, %v3415_v49 }
 0x25a   : > { %v3418_v37 = vpack.c.bf16 %v3417_v57, %v3417_v57 }
 0x25c   : > { %4319 = vmatmul.mubr.bf16.vlgmr.msra.gmra.mrb[36].mxu1 %v3418_v37 }
 0x32f   : > { %v3518_v27 = vpop.f32.mrb[36].mxu1 }
 0x330   : > { %v3519_v63 = vadd.f32 %v3518_v27, %v3435_v62  ;;  %v4320_v56 = vpop.f32.mrb[37].mxu1 }
 0x331   : > { %v3521_v7 = vpop.f32.mrb[38].mxu1 }
 0x332   : > { %3524 = vst [vmem:[%s243_s26] sm:$0x1] %v3519_v63  ;;  %v4321_v36 = vpop.f32.mrb[39].mxu1 }
 0x333   : > { %4679 = shalt.err (!%p4676_p3)
}
 0x334   : > { %s4680_s16 = scalar_lea.hbm %s6020_s11, 16  ;;  %s4684_s19 = scalar_lea.hbm %s6068_s6, 32 }
 0x335   : > { %p4681_p4 = scmp.ne.s32.totalorder %s6020_s11, %s4680_s16  ;;  %p4685_p9 = scmp.lt.u32.totalorder %s6020_s11, %s6068_s6 }
 0x336   : > { %p4686_p10 = scmp.lt.u32.totalorder %s4684_s19, %s4680_s16  ;;  %p4688_p12 = scmp.lt.u32.totalorder %s4680_s16, %s6020_s11 }
 0x337   : > { %p4682_p7 = pnand %p4681_p4, %p4808_p5 }
 0x338   : > { %p4687_p11 = por %p4686_p10, %p4685_p9 }
 0x339   : > { %p4683_p8 = pneg %p4682_p7 }
 0x33a   : > { %p4689_p13 = por %p4688_p12, %p4687_p11 }
 0x33c   : > { %p4690_p0 = pnand %p4689_p13, %p4683_p8 }
 0x33e   : > { %4693 = shalt.err (!%p4690_p0)
}
 0x33f   : > { %4613 = dma.vmem_to_hbm [thread:$0]  (%p4808_p5), %s6022_s28, 16, %s6020_s11, %s3526_s12  }
 0x340 PF: > { %p4619_p1 = scmp.ge.s32.totalorder %s4728_s24, 2  ;;  %s3550_s26 = sand.u32 1, %s4716_s21  }
 0x341   : > { %s3551_s29 = scalar_lea.sflag [#allocation3], %s3550_s26 }
 0x342   : > { %p4616_p2 = pnand %p4619_p1, %p4812_p6 }
 0x344   : > { %4711 = dma.done.wait (!%p4616_p2), %s3551_s29, 16  }
 0x345   : > { %4713 = vsyncadd (!%p4616_p2), %s3551_s29, 4294967280  ;;  %p16_p3 = scmp.ge.s32.totalorder %s4795_s27, 4   ;;  %s6142_s21 = smov %s4720_s22 }
 0x346   : > { %s6143_s22 = smov %s4724_s23  ;;  %s6144_s23 = smov %s4806_s30 }
 0x347   : > { %s6145_s24 = smov %s4795_s27  ;;  %18 = sbr.rel (!%p16_p3) target bundleno = 3 (0x3), region = 87 }
 0x34e   :  { %3555 = vsyncpa [#allocation3], 1 }
 0x34f   :  { %3557 = vsyncpa [#allocation3 + $0x1], 1 }

</bundles_post_ra>
